<compile_context>
chip_gen: v5e
topology: v5e:2x2
jax: 0.10.0
libtpu: 0.0.40
codegen_flags: <defaults>
</compile_context>

<pallas_src>
import functools

import jax
import jax.numpy as jnp
from jax.experimental import pallas as pl
from jax.experimental.pallas import tpu as pltpu

L1_NEURONS = 500
L2_NEURONS = 300
IN_FEATURES = 28 * 28   # 784
OUT_FEATURES = 10

# Lane-dense padded feature dims (multiples of 128). Zero padding is exact:
# padded bias/weight columns give relu(0 + 0) = 0, which then multiplies
# against zero-padded rows of the next weight.
IN_PAD = 896    # 784 -> 7*128
H1_PAD = 512    # 500 -> 4*128
H2_PAD = 384    # 300 -> 3*128
OUT_PAD = 128   # 10  -> 1*128


def _round_up(x, m):
    return (x + m - 1) // m * m


def _mlp_kernel(x_ref, w1_ref, b1_ref, w2_ref, b2_ref, w3_ref, b3_ref, o_ref):
    cdt = w1_ref.dtype  # MXU operand dtype (float32 or bfloat16)
    # fc1 + relu : MXU matmul with f32 accumulation, f32 epilogue on the VPU.
    h1 = jnp.dot(x_ref[...].astype(cdt), w1_ref[...],
                 preferred_element_type=jnp.float32)
    h1 = jnp.maximum(h1 + b1_ref[...], 0.0)
    # fc2 + relu
    h2 = jnp.dot(h1.astype(cdt), w2_ref[...], preferred_element_type=jnp.float32)
    h2 = jnp.maximum(h2 + b2_ref[...], 0.0)
    # fc3 + relu (OUT_PAD = 128-wide lane-dense store)
    h3 = jnp.dot(h2.astype(cdt), w3_ref[...], preferred_element_type=jnp.float32)
    o_ref[...] = jnp.maximum(h3 + b3_ref[...], 0.0).astype(o_ref.dtype)


@functools.partial(jax.jit, static_argnames=("use_bf16", "block_m"))
def two_layers_forward(x, w1, b1, w2, b2, w3, b3, *, use_bf16=False, block_m=256):
    """Pallas implementation of TwoLayers.forward.

    x:  (B, 784) float32
    w1: (784, 500), b1: (1, 500)
    w2: (500, 300), b2: (1, 300)
    w3: (300, 10),  b3: (1, 10)
    returns (B, 10) float32
    """
    B = x.shape[0]
    # Batch tile: multiple of 8 sublanes, up to block_m rows; weights stay
    # VMEM-resident across all grid steps.
    tm = max(8, min(block_m, _round_up(B, 8)))
    b_pad = _round_up(B, tm)

    # Zero-pad everything to lane-dense shapes.
    xp = jnp.pad(x, ((0, b_pad - B), (0, IN_PAD - IN_FEATURES)))
    w1p = jnp.pad(w1, ((0, IN_PAD - IN_FEATURES), (0, H1_PAD - L1_NEURONS)))
    b1p = jnp.pad(b1, ((0, 0), (0, H1_PAD - L1_NEURONS)))
    w2p = jnp.pad(w2, ((0, H1_PAD - L1_NEURONS), (0, H2_PAD - L2_NEURONS)))
    b2p = jnp.pad(b2, ((0, 0), (0, H2_PAD - L2_NEURONS)))
    w3p = jnp.pad(w3, ((0, H2_PAD - L2_NEURONS), (0, OUT_PAD - OUT_FEATURES)))
    b3p = jnp.pad(b3, ((0, 0), (0, OUT_PAD - OUT_FEATURES)))

    if use_bf16:
        # Half the weight HBM traffic + native MXU bf16 rate on v6e/v7x.
        # Biases stay f32; accumulation and epilogue stay f32.
        xp, w1p, w2p, w3p = (a.astype(jnp.bfloat16) for a in (xp, w1p, w2p, w3p))

    grid = (b_pad // tm,)
    resident = lambda i: (0, 0)  # weights/biases: same block every grid step

    flops = 2 * b_pad * (IN_PAD * H1_PAD + H1_PAD * H2_PAD + H2_PAD * OUT_PAD)
    bytes_accessed = sum(int(a.size) * a.dtype.itemsize
                         for a in (xp, w1p, b1p, w2p, b2p, w3p, b3p))
    bytes_accessed += b_pad * OUT_PAD * 4  # output

    out = pl.pallas_call(
        _mlp_kernel,
        out_shape=jax.ShapeDtypeStruct((b_pad, OUT_PAD), jnp.float32),
        grid=grid,
        in_specs=[
            pl.BlockSpec((tm, IN_PAD), lambda i: (i, 0)),
            pl.BlockSpec((IN_PAD, H1_PAD), resident),
            pl.BlockSpec((1, H1_PAD), resident),
            pl.BlockSpec((H1_PAD, H2_PAD), resident),
            pl.BlockSpec((1, H2_PAD), resident),
            pl.BlockSpec((H2_PAD, OUT_PAD), resident),
            pl.BlockSpec((1, OUT_PAD), resident),
        ],
        out_specs=pl.BlockSpec((tm, OUT_PAD), lambda i: (i, 0)),
        compiler_params=pltpu.CompilerParams(
            dimension_semantics=("parallel",)),
        cost_estimate=pl.CostEstimate(
            flops=flops, transcendentals=0, bytes_accessed=bytes_accessed),
    )(xp, w1p, b1p, w2p, b2p, w3p, b3p)

    return out[:B, :OUT_FEATURES]


def init_params(key):
    """Deterministic init mirroring nn.Linear default (U[-1/sqrt(fan_in), +))."""
    ks = jax.random.split(key, 6)

    def linear(kw, kb, fan_in, fan_out):
        bound = 1.0 / jnp.sqrt(fan_in)
        w = jax.random.uniform(kw, (fan_in, fan_out), jnp.float32, -bound, bound)
        b = jax.random.uniform(kb, (1, fan_out), jnp.float32, -bound, bound)
        return w, b

    w1, b1 = linear(ks[0], ks[1], IN_FEATURES, L1_NEURONS)
    w2, b2 = linear(ks[2], ks[3], L1_NEURONS, L2_NEURONS)
    w3, b3 = linear(ks[4], ks[5], L2_NEURONS, OUT_FEATURES)
    return w1, b1, w2, b2, w3, b3


def reference_forward(x, w1, b1, w2, b2, w3, b3):
    h = jnp.maximum(x @ w1 + b1, 0.0)
    h = jnp.maximum(h @ w2 + b2, 0.0)
    return jnp.maximum(h @ w3 + b3, 0.0)


if __name__ == "__main__":
    key = jax.random.PRNGKey(0)
    k_x, k_p = jax.random.split(key)

    B = 8
    x = jax.random.normal(k_x, (B, IN_FEATURES), jnp.float32)
    params = init_params(k_p)

    # f32 path: bit-comparable to the reference.
    out = jax.block_until_ready(two_layers_forward(x, *params))
    ref = reference_forward(x, *params)
    assert out.shape == (B, OUT_FEATURES)
    assert jnp.allclose(out, ref, atol=1e-4, rtol=1e-4)

    # bf16-weight path (perf option for v6e/v7x): f32 accumulation, loose tol.
    out_bf16 = jax.block_until_ready(two_layers_forward(x, *params, use_bf16=True))
    assert out_bf16.shape == (B, OUT_FEATURES)
    assert jnp.allclose(out_bf16, ref, atol=5e-2, rtol=5e-2)

    print("KERNEL_OK")
</pallas_src>

<mosaic_0001>
module attributes {stable_mosaic.version = 11 : i64} {
  func.func @_mlp_kernel(%arg0: i32, %arg1: memref<8x896xf32, #tpu.memory_space<vmem>>, %arg2: memref<896x512xf32, #tpu.memory_space<vmem>>, %arg3: memref<1x512xf32, #tpu.memory_space<vmem>>, %arg4: memref<512x384xf32, #tpu.memory_space<vmem>>, %arg5: memref<1x384xf32, #tpu.memory_space<vmem>>, %arg6: memref<384x128xf32, #tpu.memory_space<vmem>>, %arg7: memref<1x128xf32, #tpu.memory_space<vmem>>, %arg8: memref<8x128xf32, #tpu.memory_space<vmem>>) attributes {dimension_semantics = [#tpu.dimension_semantics<parallel>], iteration_bounds = array<i64: 1>, scalar_prefetch = 0 : i64, scratch_operands = 0 : i64, tpu.core_type = #tpu.core_type<tc>, window_params = [{transform_indices = @transform_0, window_bounds = array<i64: 8, 896>}, {pipeline_mode = #tpu.pipeline_mode<synchronous>, transform_indices = @transform_1, window_bounds = array<i64: 896, 512>}, {pipeline_mode = #tpu.pipeline_mode<synchronous>, transform_indices = @transform_2, window_bounds = array<i64: 1, 512>}, {pipeline_mode = #tpu.pipeline_mode<synchronous>, transform_indices = @transform_3, window_bounds = array<i64: 512, 384>}, {pipeline_mode = #tpu.pipeline_mode<synchronous>, transform_indices = @transform_4, window_bounds = array<i64: 1, 384>}, {pipeline_mode = #tpu.pipeline_mode<synchronous>, transform_indices = @transform_5, window_bounds = array<i64: 384, 128>}, {pipeline_mode = #tpu.pipeline_mode<synchronous>, transform_indices = @transform_6, window_bounds = array<i64: 1, 128>}, {transform_indices = @transform_7, window_bounds = array<i64: 8, 128>}]} {
    %c0 = arith.constant 0 : index
    %c0_0 = arith.constant 0 : index
    %0 = vector.load %arg1[%c0, %c0_0] : memref<8x896xf32, #tpu.memory_space<vmem>>, vector<8x896xf32>
    %c0_1 = arith.constant 0 : index
    %c0_2 = arith.constant 0 : index
    %1 = vector.load %arg2[%c0_1, %c0_2] : memref<896x512xf32, #tpu.memory_space<vmem>>, vector<896x512xf32>
    %cst = arith.constant dense<0.000000e+00> : vector<8x512xf32>
    %2 = tpu.matmul %0, %1, %cst {dimension_numbers = #tpu.dot_dimension_numbers<[1], [0], [0], [1], [0, 0, 1, 1], [], []>} : vector<8x896xf32>, vector<896x512xf32>, vector<8x512xf32> -> vector<8x512xf32>
    %c0_3 = arith.constant 0 : index
    %c0_4 = arith.constant 0 : index
    %3 = vector.load %arg3[%c0_3, %c0_4] : memref<1x512xf32, #tpu.memory_space<vmem>>, vector<1x512xf32>
    %4 = vector.broadcast %3 : vector<1x512xf32> to vector<8x512xf32>
    %5 = arith.addf %2, %4 : vector<8x512xf32>
    %cst_5 = arith.constant 0.000000e+00 : f32
    %6 = vector.broadcast %cst_5 : f32 to vector<8x512xf32>
    %7 = arith.maximumf %5, %6 : vector<8x512xf32>
    %c0_6 = arith.constant 0 : index
    %c0_7 = arith.constant 0 : index
    %8 = vector.load %arg4[%c0_6, %c0_7] : memref<512x384xf32, #tpu.memory_space<vmem>>, vector<512x384xf32>
    %cst_8 = arith.constant dense<0.000000e+00> : vector<8x384xf32>
    %9 = tpu.matmul %7, %8, %cst_8 {dimension_numbers = #tpu.dot_dimension_numbers<[1], [0], [0], [1], [0, 0, 1, 1], [], []>} : vector<8x512xf32>, vector<512x384xf32>, vector<8x384xf32> -> vector<8x384xf32>
    %c0_9 = arith.constant 0 : index
    %c0_10 = arith.constant 0 : index
    %10 = vector.load %arg5[%c0_9, %c0_10] : memref<1x384xf32, #tpu.memory_space<vmem>>, vector<1x384xf32>
    %11 = vector.broadcast %10 : vector<1x384xf32> to vector<8x384xf32>
    %12 = arith.addf %9, %11 : vector<8x384xf32>
    %cst_11 = arith.constant 0.000000e+00 : f32
    %13 = vector.broadcast %cst_11 : f32 to vector<8x384xf32>
    %14 = arith.maximumf %12, %13 : vector<8x384xf32>
    %c0_12 = arith.constant 0 : index
    %c0_13 = arith.constant 0 : index
    %15 = vector.load %arg6[%c0_12, %c0_13] : memref<384x128xf32, #tpu.memory_space<vmem>>, vector<384x128xf32>
    %cst_14 = arith.constant dense<0.000000e+00> : vector<8x128xf32>
    %16 = tpu.matmul %14, %15, %cst_14 {dimension_numbers = #tpu.dot_dimension_numbers<[1], [0], [0], [1], [0, 0, 1, 1], [], []>} : vector<8x384xf32>, vector<384x128xf32>, vector<8x128xf32> -> vector<8x128xf32>
    %c0_15 = arith.constant 0 : index
    %c0_16 = arith.constant 0 : index
    %17 = vector.load %arg7[%c0_15, %c0_16] : memref<1x128xf32, #tpu.memory_space<vmem>>, vector<1x128xf32>
    %18 = vector.broadcast %17 : vector<1x128xf32> to vector<8x128xf32>
    %19 = arith.addf %16, %18 : vector<8x128xf32>
    %cst_17 = arith.constant 0.000000e+00 : f32
    %20 = vector.broadcast %cst_17 : f32 to vector<8x128xf32>
    %21 = arith.maximumf %19, %20 : vector<8x128xf32>
    %c0_18 = arith.constant 0 : index
    %c0_19 = arith.constant 0 : index
    %22 = vector.load %arg8[%c0_18, %c0_19] : memref<8x128xf32, #tpu.memory_space<vmem>>, vector<8x128xf32>
    tpu.vector_store %arg8[%c0_18, %c0_19], %21 {strides = array<i32>} : memref<8x128xf32, #tpu.memory_space<vmem>>, vector<8x128xf32>,
    return
  }
  func.func @transform_0(%arg0: i32) -> (i32, i32) {
    %c0_i32 = arith.constant 0 : i32
    %c0_i32_0 = arith.constant 0 : i32
    return %arg0, %c0_i32 : i32, i32
  }
  func.func @transform_1(%arg0: i32) -> (i32, i32) {
    %c0_i32 = arith.constant 0 : i32
    %c0_i32_0 = arith.constant 0 : i32
    %c0_i32_1 = arith.constant 0 : i32
    return %c0_i32, %c0_i32_0 : i32, i32
  }
  func.func @transform_2(%arg0: i32) -> (i32, i32) {
    %c0_i32 = arith.constant 0 : i32
    %c0_i32_0 = arith.constant 0 : i32
    %c0_i32_1 = arith.constant 0 : i32
    return %c0_i32, %c0_i32_0 : i32, i32
  }
  func.func @transform_3(%arg0: i32) -> (i32, i32) {
    %c0_i32 = arith.constant 0 : i32
    %c0_i32_0 = arith.constant 0 : i32
    %c0_i32_1 = arith.constant 0 : i32
    return %c0_i32, %c0_i32_0 : i32, i32
  }
  func.func @transform_4(%arg0: i32) -> (i32, i32) {
    %c0_i32 = arith.constant 0 : i32
    %c0_i32_0 = arith.constant 0 : i32
    %c0_i32_1 = arith.constant 0 : i32
    return %c0_i32, %c0_i32_0 : i32, i32
  }
  func.func @transform_5(%arg0: i32) -> (i32, i32) {
    %c0_i32 = arith.constant 0 : i32
    %c0_i32_0 = arith.constant 0 : i32
    %c0_i32_1 = arith.constant 0 : i32
    return %c0_i32, %c0_i32_0 : i32, i32
  }
  func.func @transform_6(%arg0: i32) -> (i32, i32) {
    %c0_i32 = arith.constant 0 : i32
    %c0_i32_0 = arith.constant 0 : i32
    %c0_i32_1 = arith.constant 0 : i32
    return %c0_i32, %c0_i32_0 : i32, i32
  }
  func.func @transform_7(%arg0: i32) -> (i32, i32) {
    %c0_i32 = arith.constant 0 : i32
    %c0_i32_0 = arith.constant 0 : i32
    return %arg0, %c0_i32 : i32, i32
  }
}

</mosaic_0001>

<bundles_post_ra>
// kernel: two_layers_forward.1
= control target key start
LH: loop header
LB: loop body
LE: loop exit
PB: predicated region body
PF: predicated region fallthrough
CT: control target
= control target key end

     0   :  { %s3891_s0 = inlined_call_operand.vmem [shape: f32[8,896], index: 0, kind: input, shape index: {}]   ;;  %s3892_s1 = inlined_call_operand.vmem [shape: f32[896,512], index: 1, kind: input, shape index: {}]   ;;  %s3893_s2 = inlined_call_operand.vmem [shape: f32[1,512], index: 2, kind: input, shape index: {}]   ;;  %s3894_s3 = inlined_call_operand.vmem [shape: f32[512,384], index: 3, kind: input, shape index: {}]   ;;  %s3895_s4 = inlined_call_operand.vmem [shape: f32[1,384], index: 4, kind: input, shape index: {}]   ;;  %s3896_s5 = inlined_call_operand.vmem [shape: f32[384,128], index: 5, kind: input, shape index: {}]   ;;  %s3897_s6 = inlined_call_operand.vmem [shape: f32[1,128], index: 6, kind: input, shape index: {}]   ;;  %s3898_s7 = inlined_call_operand.hbm [shape: f32[8,128], index: 7, kind: output, shape index: {}]  }
   0x1   :  { %v94_v0 = vld [vmem:[%s3892_s1 + $0x1e0] sm:$0xff] }
   0x2   :  { %v158_v1 = vld [vmem:[%s3892_s1 + $0x3e0] sm:$0xff]  ;;  %492 = vmatpush.msra.mxu0 %v94_v0 }
   0x3   :  { %v222_v2 = vld [vmem:[%s3892_s1 + $0x5e0] sm:$0xff]  ;;  %512 = vmatpush.msra.mxu1 %v158_v1 }
   0x4   :  { %v90_v3 = vld [vmem:[%s3892_s1 + $0x1c0] sm:$0xff]  ;;  %532 = vmatpush.msra.mxu2 %v222_v2 }
   0x5   :  { %v154_v4 = vld [vmem:[%s3892_s1 + $0x3c0] sm:$0xff]  ;;  %493 = vmatpush.msra.mxu0 %v90_v3 }
   0x6   :  { %v218_v5 = vld [vmem:[%s3892_s1 + $0x5c0] sm:$0xff]  ;;  %513 = vmatpush.msra.mxu1 %v154_v4 }
   0x7   :  { %v286_v6 = vld [vmem:[%s3892_s1 + $0x7e0] sm:$0xff]  ;;  %533 = vmatpush.msra.mxu2 %v218_v5 }
   0x8   :  { %v86_v7 = vld [vmem:[%s3892_s1 + $0x1a0] sm:$0xff]  ;;  %552 = vmatpush.msra.mxu3 %v286_v6  ;;  %v95_v6 = vld [vmem:[%s3892_s1 + $0x1e8] sm:$0xff] }
   0x9   :  { %v150_v8 = vld [vmem:[%s3892_s1 + $0x3a0] sm:$0xff]  ;;  %494 = vmatpush.msra.mxu0 %v86_v7 }
   0xa   :  { %v214_v9 = vld [vmem:[%s3892_s1 + $0x5a0] sm:$0xff]  ;;  %514 = vmatpush.msra.mxu1 %v150_v8 }
   0xb   :  { %v282_v10 = vld [vmem:[%s3892_s1 + $0x7c0] sm:$0xff]  ;;  %534 = vmatpush.msra.mxu2 %v214_v9 }
   0xc   :  { %v82_v11 = vld [vmem:[%s3892_s1 + $0x180] sm:$0xff]  ;;  %553 = vmatpush.msra.mxu3 %v282_v10  ;;  %v91_v10 = vld [vmem:[%s3892_s1 + $0x1c8] sm:$0xff] }
   0xd   :  { %v146_v12 = vld [vmem:[%s3892_s1 + $0x380] sm:$0xff]  ;;  %495 = vmatpush.msra.mxu0 %v82_v11 }
   0xe   :  { %v210_v13 = vld [vmem:[%s3892_s1 + $0x580] sm:$0xff]  ;;  %515 = vmatpush.msra.mxu1 %v146_v12 }
   0xf   :  { %v278_v14 = vld [vmem:[%s3892_s1 + $0x7a0] sm:$0xff]  ;;  %535 = vmatpush.msra.mxu2 %v210_v13 }
  0x10   :  { %v78_v15 = vld [vmem:[%s3892_s1 + $0x160] sm:$0xff]  ;;  %554 = vmatpush.msra.mxu3 %v278_v14  ;;  %v87_v14 = vld [vmem:[%s3892_s1 + $0x1a8] sm:$0xff] }
  0x11   :  { %v142_v16 = vld [vmem:[%s3892_s1 + $0x360] sm:$0xff]  ;;  %496 = vmatpush.msra.mxu0 %v78_v15 }
  0x12   :  { %v206_v17 = vld [vmem:[%s3892_s1 + $0x560] sm:$0xff]  ;;  %516 = vmatpush.msra.mxu1 %v142_v16 }
  0x13   :  { %v274_v18 = vld [vmem:[%s3892_s1 + $0x780] sm:$0xff]  ;;  %536 = vmatpush.msra.mxu2 %v206_v17 }
  0x14   :  { %v74_v19 = vld [vmem:[%s3892_s1 + $0x140] sm:$0xff]  ;;  %555 = vmatpush.msra.mxu3 %v274_v18  ;;  %v83_v18 = vld [vmem:[%s3892_s1 + $0x188] sm:$0xff] }
  0x15   :  { %v138_v20 = vld [vmem:[%s3892_s1 + $0x340] sm:$0xff]  ;;  %497 = vmatpush.msra.mxu0 %v74_v19 }
  0x16   :  { %v202_v21 = vld [vmem:[%s3892_s1 + $0x540] sm:$0xff]  ;;  %517 = vmatpush.msra.mxu1 %v138_v20 }
  0x17   :  { %v270_v22 = vld [vmem:[%s3892_s1 + $0x760] sm:$0xff]  ;;  %537 = vmatpush.msra.mxu2 %v202_v21 }
  0x18   :  { %v70_v23 = vld [vmem:[%s3892_s1 + $0x120] sm:$0xff]  ;;  %556 = vmatpush.msra.mxu3 %v270_v22  ;;  %v79_v22 = vld [vmem:[%s3892_s1 + $0x168] sm:$0xff] }
  0x19   :  { %v134_v24 = vld [vmem:[%s3892_s1 + $0x320] sm:$0xff]  ;;  %498 = vmatpush.msra.mxu0 %v70_v23 }
  0x1a   :  { %v198_v25 = vld [vmem:[%s3892_s1 + $0x520] sm:$0xff]  ;;  %518 = vmatpush.msra.mxu1 %v134_v24 }
  0x1b   :  { %v266_v26 = vld [vmem:[%s3892_s1 + $0x740] sm:$0xff]  ;;  %538 = vmatpush.msra.mxu2 %v198_v25 }
  0x1c   :  { %v66_v27 = vld [vmem:[%s3892_s1 + $0x100] sm:$0xff]  ;;  %557 = vmatpush.msra.mxu3 %v266_v26  ;;  %v75_v26 = vld [vmem:[%s3892_s1 + $0x148] sm:$0xff] }
  0x1d   :  { %v130_v28 = vld [vmem:[%s3892_s1 + $0x300] sm:$0xff]  ;;  %499 = vmatpush.msra.mxu0 %v66_v27 }
  0x1e   :  { %v194_v29 = vld [vmem:[%s3892_s1 + $0x500] sm:$0xff]  ;;  %519 = vmatpush.msra.mxu1 %v130_v28 }
  0x1f   :  { %v262_v30 = vld [vmem:[%s3892_s1 + $0x720] sm:$0xff]  ;;  %539 = vmatpush.msra.mxu2 %v194_v29 }
  0x20   :  { %v62_v31 = vld [vmem:[%s3892_s1 + $0xe0] sm:$0xff]  ;;  %558 = vmatpush.msra.mxu3 %v262_v30  ;;  %v71_v30 = vld [vmem:[%s3892_s1 + $0x128] sm:$0xff] }
  0x21   :  { %v126_v32 = vld [vmem:[%s3892_s1 + $0x2e0] sm:$0xff]  ;;  %500 = vmatpush.msra.mxu0 %v62_v31 }
  0x22   :  { %v190_v33 = vld [vmem:[%s3892_s1 + $0x4e0] sm:$0xff]  ;;  %520 = vmatpush.msra.mxu1 %v126_v32 }
  0x23   :  { %v258_v34 = vld [vmem:[%s3892_s1 + $0x700] sm:$0xff]  ;;  %540 = vmatpush.msra.mxu2 %v190_v33 }
  0x24   :  { %v58_v35 = vld [vmem:[%s3892_s1 + $0xc0] sm:$0xff]  ;;  %559 = vmatpush.msra.mxu3 %v258_v34  ;;  %v67_v34 = vld [vmem:[%s3892_s1 + $0x108] sm:$0xff] }
  0x25   :  { %v122_v36 = vld [vmem:[%s3892_s1 + $0x2c0] sm:$0xff]  ;;  %501 = vmatpush.msra.mxu0 %v58_v35 }
  0x26   :  { %v186_v37 = vld [vmem:[%s3892_s1 + $0x4c0] sm:$0xff]  ;;  %521 = vmatpush.msra.mxu1 %v122_v36 }
  0x27   :  { %v254_v38 = vld [vmem:[%s3892_s1 + $0x6e0] sm:$0xff]  ;;  %541 = vmatpush.msra.mxu2 %v186_v37 }
  0x28   :  { %v54_v39 = vld [vmem:[%s3892_s1 + $0xa0] sm:$0xff]  ;;  %560 = vmatpush.msra.mxu3 %v254_v38  ;;  %v63_v38 = vld [vmem:[%s3892_s1 + $0xe8] sm:$0xff] }
  0x29   :  { %v118_v40 = vld [vmem:[%s3892_s1 + $0x2a0] sm:$0xff]  ;;  %502 = vmatpush.msra.mxu0 %v54_v39 }
  0x2a   :  { %v182_v41 = vld [vmem:[%s3892_s1 + $0x4a0] sm:$0xff]  ;;  %522 = vmatpush.msra.mxu1 %v118_v40 }
  0x2b   :  { %v250_v42 = vld [vmem:[%s3892_s1 + $0x6c0] sm:$0xff]  ;;  %542 = vmatpush.msra.mxu2 %v182_v41 }
  0x2c   :  { %v50_v43 = vld [vmem:[%s3892_s1 + $0x80] sm:$0xff]  ;;  %561 = vmatpush.msra.mxu3 %v250_v42  ;;  %v59_v42 = vld [vmem:[%s3892_s1 + $0xc8] sm:$0xff] }
  0x2d   :  { %v114_v44 = vld [vmem:[%s3892_s1 + $0x280] sm:$0xff]  ;;  %503 = vmatpush.msra.mxu0 %v50_v43 }
  0x2e   :  { %v178_v45 = vld [vmem:[%s3892_s1 + $0x480] sm:$0xff]  ;;  %523 = vmatpush.msra.mxu1 %v114_v44 }
  0x2f   :  { %v246_v46 = vld [vmem:[%s3892_s1 + $0x6a0] sm:$0xff]  ;;  %543 = vmatpush.msra.mxu2 %v178_v45 }
  0x30   :  { %v46_v47 = vld [vmem:[%s3892_s1 + $0x60] sm:$0xff]  ;;  %562 = vmatpush.msra.mxu3 %v246_v46  ;;  %v55_v46 = vld [vmem:[%s3892_s1 + $0xa8] sm:$0xff] }
  0x31   :  { %v110_v48 = vld [vmem:[%s3892_s1 + $0x260] sm:$0xff]  ;;  %504 = vmatpush.msra.mxu0 %v46_v47 }
  0x32   :  { %v174_v49 = vld [vmem:[%s3892_s1 + $0x460] sm:$0xff]  ;;  %524 = vmatpush.msra.mxu1 %v110_v48 }
  0x33   :  { %v242_v50 = vld [vmem:[%s3892_s1 + $0x680] sm:$0xff]  ;;  %544 = vmatpush.msra.mxu2 %v174_v49 }
  0x34   :  { %v42_v51 = vld [vmem:[%s3892_s1 + $0x40] sm:$0xff]  ;;  %563 = vmatpush.msra.mxu3 %v242_v50  ;;  %v51_v50 = vld [vmem:[%s3892_s1 + $0x88] sm:$0xff] }
  0x35   :  { %v106_v52 = vld [vmem:[%s3892_s1 + $0x240] sm:$0xff]  ;;  %505 = vmatpush.msra.mxu0 %v42_v51 }
  0x36   :  { %v170_v53 = vld [vmem:[%s3892_s1 + $0x440] sm:$0xff]  ;;  %525 = vmatpush.msra.mxu1 %v106_v52 }
  0x37   :  { %v238_v54 = vld [vmem:[%s3892_s1 + $0x660] sm:$0xff]  ;;  %545 = vmatpush.msra.mxu2 %v170_v53 }
  0x38   :  { %v38_v55 = vld [vmem:[%s3892_s1 + $0x20] sm:$0xff]  ;;  %564 = vmatpush.msra.mxu3 %v238_v54  ;;  %v47_v54 = vld [vmem:[%s3892_s1 + $0x68] sm:$0xff] }
  0x39   :  { %v102_v56 = vld [vmem:[%s3892_s1 + $0x220] sm:$0xff]  ;;  %506 = vmatpush.msra.mxu0 %v38_v55 }
  0x3a   :  { %v166_v57 = vld [vmem:[%s3892_s1 + $0x420] sm:$0xff]  ;;  %526 = vmatpush.msra.mxu1 %v102_v56 }
  0x3b   :  { %v234_v58 = vld [vmem:[%s3892_s1 + $0x640] sm:$0xff]  ;;  %546 = vmatpush.msra.mxu2 %v166_v57 }
  0x3c   :  { %v34_v59 = vld [vmem:[%s3892_s1] sm:$0xff]  ;;  %565 = vmatpush.msra.mxu3 %v234_v58  ;;  %v43_v58 = vld [vmem:[%s3892_s1 + $0x48] sm:$0xff] }
  0x3d   :  { %v98_v60 = vld [vmem:[%s3892_s1 + $0x200] sm:$0xff]  ;;  %507 = vmatpush.msra.mxu0 %v34_v59 }
  0x3e   :  { %v162_v61 = vld [vmem:[%s3892_s1 + $0x400] sm:$0xff]  ;;  %527 = vmatpush.msra.mxu1 %v98_v60 }
  0x3f   :  { %v230_v62 = vld [vmem:[%s3892_s1 + $0x620] sm:$0xff]  ;;  %547 = vmatpush.msra.mxu2 %v162_v61 }
  0x40   :  { %v350_v63 = vld [vmem:[%s3892_s1 + $0x9e0] sm:$0xff]  ;;  %566 = vmatpush.msra.mxu3 %v230_v62  ;;  %v39_v62 = vld [vmem:[%s3892_s1 + $0x28] sm:$0xff] }
  0x41   :  { %v414_v0 = vld [vmem:[%s3892_s1 + $0xbe0] sm:$0xff]  ;;  %572 = vmatpush.msrb.mxu0 %v350_v63 }
  0x42   :  { %v478_v1 = vld [vmem:[%s3892_s1 + $0xde0] sm:$0xff]  ;;  %592 = vmatpush.msrb.mxu1 %v414_v0  ;;  %v2094_v0 = vld [vmem:[%s3891_s0 + $0x8] sm:$0xff] }
  0x43   :  { %v226_v2 = vld [vmem:[%s3892_s1 + $0x600] sm:$0xff]  ;;  %612 = vmatpush.msrb.mxu2 %v478_v1  ;;  %v2099_v1 = vld [vmem:[%s3891_s0 + $0x10] sm:$0xff] }
  0x44   :  { %v346_v3 = vld [vmem:[%s3892_s1 + $0x9c0] sm:$0xff]  ;;  %567 = vmatpush.msra.mxu3 %v226_v2  ;;  %v159_v2 = vld [vmem:[%s3892_s1 + $0x3e8] sm:$0xff] }
  0x45   :  { %v410_v4 = vld [vmem:[%s3892_s1 + $0xbc0] sm:$0xff]  ;;  %573 = vmatpush.msrb.mxu0 %v346_v3 }
  0x46   :  { %v474_v5 = vld [vmem:[%s3892_s1 + $0xdc0] sm:$0xff]  ;;  %593 = vmatpush.msrb.mxu1 %v410_v4  ;;  %632 = vmatpush.msrb.mxu3 %v95_v6 }
  0x47   :  { %v342_v7 = vld [vmem:[%s3892_s1 + $0x9a0] sm:$0xff]  ;;  %613 = vmatpush.msrb.mxu2 %v474_v5 }
  0x48   :  { %v406_v8 = vld [vmem:[%s3892_s1 + $0xba0] sm:$0xff]  ;;  %574 = vmatpush.msrb.mxu0 %v342_v7  ;;  %633 = vmatpush.msrb.mxu3 %v91_v10 }
  0x49   :  { %v470_v9 = vld [vmem:[%s3892_s1 + $0xda0] sm:$0xff]  ;;  %594 = vmatpush.msrb.mxu1 %v406_v8 }
  0x4a   :  { %v338_v11 = vld [vmem:[%s3892_s1 + $0x980] sm:$0xff]  ;;  %614 = vmatpush.msrb.mxu2 %v470_v9  ;;  %634 = vmatpush.msrb.mxu3 %v87_v14 }
  0x4b   :  { %v402_v12 = vld [vmem:[%s3892_s1 + $0xb80] sm:$0xff]  ;;  %575 = vmatpush.msrb.mxu0 %v338_v11 }
  0x4c   :  { %v466_v13 = vld [vmem:[%s3892_s1 + $0xd80] sm:$0xff]  ;;  %595 = vmatpush.msrb.mxu1 %v402_v12  ;;  %635 = vmatpush.msrb.mxu3 %v83_v18 }
  0x4d   :  { %v334_v15 = vld [vmem:[%s3892_s1 + $0x960] sm:$0xff]  ;;  %615 = vmatpush.msrb.mxu2 %v466_v13 }
  0x4e   :  { %v398_v16 = vld [vmem:[%s3892_s1 + $0xb60] sm:$0xff]  ;;  %576 = vmatpush.msrb.mxu0 %v334_v15  ;;  %636 = vmatpush.msrb.mxu3 %v79_v22 }
  0x4f   :  { %v462_v17 = vld [vmem:[%s3892_s1 + $0xd60] sm:$0xff]  ;;  %596 = vmatpush.msrb.mxu1 %v398_v16 }
  0x50   :  { %v330_v19 = vld [vmem:[%s3892_s1 + $0x940] sm:$0xff]  ;;  %616 = vmatpush.msrb.mxu2 %v462_v17  ;;  %637 = vmatpush.msrb.mxu3 %v75_v26 }
  0x51   :  { %v394_v20 = vld [vmem:[%s3892_s1 + $0xb40] sm:$0xff]  ;;  %577 = vmatpush.msrb.mxu0 %v330_v19 }
  0x52   :  { %v458_v21 = vld [vmem:[%s3892_s1 + $0xd40] sm:$0xff]  ;;  %597 = vmatpush.msrb.mxu1 %v394_v20  ;;  %638 = vmatpush.msrb.mxu3 %v71_v30 }
  0x53   :  { %v326_v23 = vld [vmem:[%s3892_s1 + $0x920] sm:$0xff]  ;;  %617 = vmatpush.msrb.mxu2 %v458_v21 }
  0x54   :  { %v390_v24 = vld [vmem:[%s3892_s1 + $0xb20] sm:$0xff]  ;;  %578 = vmatpush.msrb.mxu0 %v326_v23  ;;  %639 = vmatpush.msrb.mxu3 %v67_v34 }
  0x55   :  { %v454_v25 = vld [vmem:[%s3892_s1 + $0xd20] sm:$0xff]  ;;  %598 = vmatpush.msrb.mxu1 %v390_v24 }
  0x56   :  { %v322_v27 = vld [vmem:[%s3892_s1 + $0x900] sm:$0xff]  ;;  %618 = vmatpush.msrb.mxu2 %v454_v25  ;;  %640 = vmatpush.msrb.mxu3 %v63_v38 }
  0x57   :  { %v386_v28 = vld [vmem:[%s3892_s1 + $0xb00] sm:$0xff]  ;;  %579 = vmatpush.msrb.mxu0 %v322_v27 }
  0x58   :  { %v450_v29 = vld [vmem:[%s3892_s1 + $0xd00] sm:$0xff]  ;;  %599 = vmatpush.msrb.mxu1 %v386_v28  ;;  %641 = vmatpush.msrb.mxu3 %v59_v42 }
  0x59   :  { %v318_v31 = vld [vmem:[%s3892_s1 + $0x8e0] sm:$0xff]  ;;  %619 = vmatpush.msrb.mxu2 %v450_v29 }
  0x5a   :  { %v382_v32 = vld [vmem:[%s3892_s1 + $0xae0] sm:$0xff]  ;;  %580 = vmatpush.msrb.mxu0 %v318_v31  ;;  %642 = vmatpush.msrb.mxu3 %v55_v46 }
  0x5b   :  { %v446_v33 = vld [vmem:[%s3892_s1 + $0xce0] sm:$0xff]  ;;  %600 = vmatpush.msrb.mxu1 %v382_v32 }
  0x5c   :  { %v314_v35 = vld [vmem:[%s3892_s1 + $0x8c0] sm:$0xff]  ;;  %620 = vmatpush.msrb.mxu2 %v446_v33  ;;  %643 = vmatpush.msrb.mxu3 %v51_v50 }
  0x5d   :  { %v378_v36 = vld [vmem:[%s3892_s1 + $0xac0] sm:$0xff]  ;;  %581 = vmatpush.msrb.mxu0 %v314_v35 }
  0x5e   :  { %v442_v37 = vld [vmem:[%s3892_s1 + $0xcc0] sm:$0xff]  ;;  %601 = vmatpush.msrb.mxu1 %v378_v36  ;;  %644 = vmatpush.msrb.mxu3 %v47_v54 }
  0x5f   :  { %v310_v39 = vld [vmem:[%s3892_s1 + $0x8a0] sm:$0xff]  ;;  %621 = vmatpush.msrb.mxu2 %v442_v37 }
  0x60   :  { %v374_v40 = vld [vmem:[%s3892_s1 + $0xaa0] sm:$0xff]  ;;  %582 = vmatpush.msrb.mxu0 %v310_v39  ;;  %645 = vmatpush.msrb.mxu3 %v43_v58 }
  0x61   :  { %v438_v41 = vld [vmem:[%s3892_s1 + $0xca0] sm:$0xff]  ;;  %602 = vmatpush.msrb.mxu1 %v374_v40 }
  0x62   :  { %v306_v43 = vld [vmem:[%s3892_s1 + $0x880] sm:$0xff]  ;;  %622 = vmatpush.msrb.mxu2 %v438_v41 }
  0x63   :  { %v370_v44 = vld [vmem:[%s3892_s1 + $0xa80] sm:$0xff]  ;;  %583 = vmatpush.msrb.mxu0 %v306_v43 }
  0x64   :  { %v434_v45 = vld [vmem:[%s3892_s1 + $0xc80] sm:$0xff]  ;;  %603 = vmatpush.msrb.mxu1 %v370_v44 }
  0x65   :  { %v302_v47 = vld [vmem:[%s3892_s1 + $0x860] sm:$0xff]  ;;  %623 = vmatpush.msrb.mxu2 %v434_v45 }
  0x66   :  { %v366_v48 = vld [vmem:[%s3892_s1 + $0xa60] sm:$0xff]  ;;  %584 = vmatpush.msrb.mxu0 %v302_v47 }
  0x67   :  { %v430_v49 = vld [vmem:[%s3892_s1 + $0xc60] sm:$0xff]  ;;  %604 = vmatpush.msrb.mxu1 %v366_v48 }
  0x68   :  { %v298_v51 = vld [vmem:[%s3892_s1 + $0x840] sm:$0xff]  ;;  %624 = vmatpush.msrb.mxu2 %v430_v49 }
  0x69   :  { %v362_v52 = vld [vmem:[%s3892_s1 + $0xa40] sm:$0xff]  ;;  %585 = vmatpush.msrb.mxu0 %v298_v51 }
  0x6a   :  { %v426_v53 = vld [vmem:[%s3892_s1 + $0xc40] sm:$0xff]  ;;  %605 = vmatpush.msrb.mxu1 %v362_v52 }
  0x6b   :  { %v294_v55 = vld [vmem:[%s3892_s1 + $0x820] sm:$0xff]  ;;  %625 = vmatpush.msrb.mxu2 %v426_v53 }
  0x6c   :  { %v358_v56 = vld [vmem:[%s3892_s1 + $0xa20] sm:$0xff]  ;;  %586 = vmatpush.msrb.mxu0 %v294_v55 }
  0x6d   :  { %v422_v57 = vld [vmem:[%s3892_s1 + $0xc20] sm:$0xff]  ;;  %606 = vmatpush.msrb.mxu1 %v358_v56 }
  0x6e   :  { %v290_v59 = vld [vmem:[%s3892_s1 + $0x800] sm:$0xff]  ;;  %626 = vmatpush.msrb.mxu2 %v422_v57 }
  0x6f   :  { %v354_v60 = vld [vmem:[%s3892_s1 + $0xa00] sm:$0xff]  ;;  %587 = vmatpush.msrb.mxu0 %v290_v59 }
  0x70   :  { %v418_v61 = vld [vmem:[%s3892_s1 + $0xc00] sm:$0xff]  ;;  %607 = vmatpush.msrb.mxu1 %v354_v60 }
  0x71   :  { %v2089_v63 = vld [vmem:[%s3891_s0] sm:$0xff] }
  0x72   :  { %12 = vsyncpa [#allocation3], 0  ;;  %627 = vmatpush.msrb.mxu2 %v418_v61  ;;  %646 = vmatpush.msrb.mxu3 %v39_v62  ;;  %v223_v3 = vld [vmem:[%s3892_s1 + $0x5e8] sm:$0xff]  ;;  %v2122_v7 = vld [vmem:[%s3891_s0 + $0x18] sm:$0xff]  ;;  %s1664_s15 = smov [#allocation2]   ;;  %s1620_s18 = sshll.u32 %s3898_s7, 4  ;;  %s1621_s18 = int_to_ptr.hbm [resolvable:$true] %s1620_s18 }
  0x73   :  { %v287_v4 = vld [vmem:[%s3892_s1 + $0x7e8] sm:$0xff]  ;;  %508 = vmatmul.f32.vlgmr.msra.gmra.mxu0 %v2089_v63  ;;  %528 = vmatmul.f32.vlgmr.msra.gmra.mxu1 %v2094_v0  ;;  %v2161_v19 = vld [vmem:[%s3891_s0 + $0x30] sm:$0xff]  ;;  %v2178_v24 = vld [vmem:[%s3891_s0 + $0x20] sm:$0xff] }
  0x74   :  { %v35_v5 = vld [vmem:[%s3892_s1 + $0x8] sm:$0xff]  ;;  %548 = vmatmul.f32.vlgmr.msra.gmra.mxu2 %v2099_v1  ;;  %652 = vmatpush.msra.mxu0 %v159_v2 }
  0x75   :  { %v155_v6 = vld [vmem:[%s3892_s1 + $0x3c8] sm:$0xff]  ;;  %672 = vmatpush.msra.mxu1 %v223_v3  ;;  %692 = vmatpush.msra.mxu2 %v287_v4 }
  0x76   :  { %v219_v8 = vld [vmem:[%s3892_s1 + $0x5c8] sm:$0xff]  ;;  %647 = vmatpush.msrb.mxu3 %v35_v5  ;;  %653 = vmatpush.msra.mxu0 %v155_v6 }
  0x77   :  { %v283_v9 = vld [vmem:[%s3892_s1 + $0x7c8] sm:$0xff]  ;;  %568 = vmatmul.f32.vlgmr.msra.gmra.mxu3 %v2122_v7  ;;  %673 = vmatpush.msra.mxu1 %v219_v8 }
  0x78   :  { %v351_v10 = vld [vmem:[%s3892_s1 + $0x9e8] sm:$0xff]  ;;  %693 = vmatpush.msra.mxu2 %v283_v9 }
  0x79   :  { %v151_v11 = vld [vmem:[%s3892_s1 + $0x3a8] sm:$0xff]  ;;  %712 = vmatpush.msra.mxu3 %v351_v10 }
  0x7a   :  { %v215_v12 = vld [vmem:[%s3892_s1 + $0x5a8] sm:$0xff]  ;;  %654 = vmatpush.msra.mxu0 %v151_v11 }
  0x7b   :  { %v279_v13 = vld [vmem:[%s3892_s1 + $0x7a8] sm:$0xff]  ;;  %674 = vmatpush.msra.mxu1 %v215_v12  ;;  %588 = vmatmul.f32.vlgmr.msrb.gmra.mxu0 %v2178_v24  ;;  %v96_v12 = vld [vmem:[%s3892_s1 + $0x1f0] sm:$0xff] }
  0x7c   :  { %v347_v14 = vld [vmem:[%s3892_s1 + $0x9c8] sm:$0xff]  ;;  %694 = vmatpush.msra.mxu2 %v279_v13 }
  0x7d   :  { %v147_v15 = vld [vmem:[%s3892_s1 + $0x388] sm:$0xff]  ;;  %713 = vmatpush.msra.mxu3 %v347_v14  ;;  %628 = vmatmul.f32.vlgmr.msrb.gmra.mxu2 %v2161_v19 }
  0x7e   :  { %v211_v16 = vld [vmem:[%s3892_s1 + $0x588] sm:$0xff]  ;;  %655 = vmatpush.msra.mxu0 %v147_v15 }
  0x7f   :  { %v275_v17 = vld [vmem:[%s3892_s1 + $0x788] sm:$0xff]  ;;  %675 = vmatpush.msra.mxu1 %v211_v16  ;;  %v92_v16 = vld [vmem:[%s3892_s1 + $0x1d0] sm:$0xff]  ;;  %648 = vmatmul.f32.vlgmr.msrb.gmra.mxu3 %v2089_v63 }
  0x80   :  { %v343_v18 = vld [vmem:[%s3892_s1 + $0x9a8] sm:$0xff]  ;;  %695 = vmatpush.msra.mxu2 %v275_v17  ;;  %v160_v17 = vld [vmem:[%s3892_s1 + $0x3f0] sm:$0xff] }
  0x81   :  { %v143_v20 = vld [vmem:[%s3892_s1 + $0x368] sm:$0xff]  ;;  %714 = vmatpush.msra.mxu3 %v343_v18 }
  0x82   :  { %v207_v21 = vld [vmem:[%s3892_s1 + $0x568] sm:$0xff]  ;;  %656 = vmatpush.msra.mxu0 %v143_v20 }
  0x83   :  { %v271_v22 = vld [vmem:[%s3892_s1 + $0x768] sm:$0xff]  ;;  %676 = vmatpush.msra.mxu1 %v207_v21  ;;  %v88_v21 = vld [vmem:[%s3892_s1 + $0x1b0] sm:$0xff] }
  0x84   :  { %v339_v23 = vld [vmem:[%s3892_s1 + $0x988] sm:$0xff]  ;;  %696 = vmatpush.msra.mxu2 %v271_v22  ;;  %v156_v22 = vld [vmem:[%s3892_s1 + $0x3d0] sm:$0xff] }
  0x85   :  { %v139_v25 = vld [vmem:[%s3892_s1 + $0x348] sm:$0xff]  ;;  %715 = vmatpush.msra.mxu3 %v339_v23 }
  0x86   :  { %v203_v26 = vld [vmem:[%s3892_s1 + $0x548] sm:$0xff]  ;;  %657 = vmatpush.msra.mxu0 %v139_v25 }
  0x87   :  { %v267_v27 = vld [vmem:[%s3892_s1 + $0x748] sm:$0xff]  ;;  %677 = vmatpush.msra.mxu1 %v203_v26  ;;  %v84_v26 = vld [vmem:[%s3892_s1 + $0x190] sm:$0xff] }
  0x88   :  { %v335_v28 = vld [vmem:[%s3892_s1 + $0x968] sm:$0xff]  ;;  %697 = vmatpush.msra.mxu2 %v267_v27  ;;  %v152_v27 = vld [vmem:[%s3892_s1 + $0x3b0] sm:$0xff] }
  0x89   :  { %v2197_v29 = vld [vmem:[%s3891_s0 + $0x28] sm:$0xff]  ;;  %716 = vmatpush.msra.mxu3 %v335_v28 }
  0x8a   :  { %v135_v30 = vld [vmem:[%s3892_s1 + $0x328] sm:$0xff]  ;;  %608 = vmatmul.f32.vlgmr.msrb.gmra.mxu1 %v2197_v29 }
  0x8b   :  { %v199_v31 = vld [vmem:[%s3892_s1 + $0x528] sm:$0xff]  ;;  %658 = vmatpush.msra.mxu0 %v135_v30 }
  0x8c   :  { %v263_v32 = vld [vmem:[%s3892_s1 + $0x728] sm:$0xff]  ;;  %678 = vmatpush.msra.mxu1 %v199_v31  ;;  %v80_v31 = vld [vmem:[%s3892_s1 + $0x170] sm:$0xff] }
  0x8d   :  { %v331_v33 = vld [vmem:[%s3892_s1 + $0x948] sm:$0xff]  ;;  %698 = vmatpush.msra.mxu2 %v263_v32  ;;  %v148_v32 = vld [vmem:[%s3892_s1 + $0x390] sm:$0xff] }
  0x8e   :  { %v131_v34 = vld [vmem:[%s3892_s1 + $0x308] sm:$0xff]  ;;  %717 = vmatpush.msra.mxu3 %v331_v33 }
  0x8f   :  { %v195_v35 = vld [vmem:[%s3892_s1 + $0x508] sm:$0xff]  ;;  %659 = vmatpush.msra.mxu0 %v131_v34 }
  0x90   :  { %v259_v36 = vld [vmem:[%s3892_s1 + $0x708] sm:$0xff]  ;;  %679 = vmatpush.msra.mxu1 %v195_v35  ;;  %v76_v35 = vld [vmem:[%s3892_s1 + $0x150] sm:$0xff] }
  0x91   :  { %v327_v37 = vld [vmem:[%s3892_s1 + $0x928] sm:$0xff]  ;;  %699 = vmatpush.msra.mxu2 %v259_v36  ;;  %v144_v36 = vld [vmem:[%s3892_s1 + $0x370] sm:$0xff] }
  0x92   :  { %v127_v38 = vld [vmem:[%s3892_s1 + $0x2e8] sm:$0xff]  ;;  %718 = vmatpush.msra.mxu3 %v327_v37 }
  0x93   :  { %v191_v39 = vld [vmem:[%s3892_s1 + $0x4e8] sm:$0xff]  ;;  %660 = vmatpush.msra.mxu0 %v127_v38 }
  0x94   :  { %v255_v40 = vld [vmem:[%s3892_s1 + $0x6e8] sm:$0xff]  ;;  %680 = vmatpush.msra.mxu1 %v191_v39  ;;  %v72_v39 = vld [vmem:[%s3892_s1 + $0x130] sm:$0xff] }
  0x95   :  { %v323_v41 = vld [vmem:[%s3892_s1 + $0x908] sm:$0xff]  ;;  %700 = vmatpush.msra.mxu2 %v255_v40  ;;  %v140_v40 = vld [vmem:[%s3892_s1 + $0x350] sm:$0xff] }
  0x96   :  { %v123_v42 = vld [vmem:[%s3892_s1 + $0x2c8] sm:$0xff]  ;;  %719 = vmatpush.msra.mxu3 %v323_v41 }
  0x97   :  { %v187_v43 = vld [vmem:[%s3892_s1 + $0x4c8] sm:$0xff]  ;;  %661 = vmatpush.msra.mxu0 %v123_v42 }
  0x98   :  { %v251_v44 = vld [vmem:[%s3892_s1 + $0x6c8] sm:$0xff]  ;;  %681 = vmatpush.msra.mxu1 %v187_v43  ;;  %v68_v43 = vld [vmem:[%s3892_s1 + $0x110] sm:$0xff] }
  0x99   :  { %v319_v45 = vld [vmem:[%s3892_s1 + $0x8e8] sm:$0xff]  ;;  %701 = vmatpush.msra.mxu2 %v251_v44  ;;  %v136_v44 = vld [vmem:[%s3892_s1 + $0x330] sm:$0xff] }
  0x9a   :  { %v119_v46 = vld [vmem:[%s3892_s1 + $0x2a8] sm:$0xff]  ;;  %720 = vmatpush.msra.mxu3 %v319_v45 }
  0x9b   :  { %v183_v47 = vld [vmem:[%s3892_s1 + $0x4a8] sm:$0xff]  ;;  %662 = vmatpush.msra.mxu0 %v119_v46 }
  0x9c   :  { %v247_v48 = vld [vmem:[%s3892_s1 + $0x6a8] sm:$0xff]  ;;  %682 = vmatpush.msra.mxu1 %v183_v47  ;;  %v64_v47 = vld [vmem:[%s3892_s1 + $0xf0] sm:$0xff] }
  0x9d   :  { %v315_v49 = vld [vmem:[%s3892_s1 + $0x8c8] sm:$0xff]  ;;  %702 = vmatpush.msra.mxu2 %v247_v48  ;;  %v132_v48 = vld [vmem:[%s3892_s1 + $0x310] sm:$0xff] }
  0x9e   :  { %v115_v50 = vld [vmem:[%s3892_s1 + $0x288] sm:$0xff]  ;;  %721 = vmatpush.msra.mxu3 %v315_v49 }
  0x9f   :  { %v179_v51 = vld [vmem:[%s3892_s1 + $0x488] sm:$0xff]  ;;  %663 = vmatpush.msra.mxu0 %v115_v50 }
  0xa0   :  { %v243_v52 = vld [vmem:[%s3892_s1 + $0x688] sm:$0xff]  ;;  %683 = vmatpush.msra.mxu1 %v179_v51  ;;  %v60_v51 = vld [vmem:[%s3892_s1 + $0xd0] sm:$0xff] }
  0xa1   :  { %v311_v53 = vld [vmem:[%s3892_s1 + $0x8a8] sm:$0xff]  ;;  %703 = vmatpush.msra.mxu2 %v243_v52  ;;  %v128_v52 = vld [vmem:[%s3892_s1 + $0x2f0] sm:$0xff] }
  0xa2   :  { %v111_v54 = vld [vmem:[%s3892_s1 + $0x268] sm:$0xff]  ;;  %722 = vmatpush.msra.mxu3 %v311_v53 }
  0xa3   :  { %v175_v55 = vld [vmem:[%s3892_s1 + $0x468] sm:$0xff]  ;;  %664 = vmatpush.msra.mxu0 %v111_v54 }
  0xa4   :  { %v239_v56 = vld [vmem:[%s3892_s1 + $0x668] sm:$0xff]  ;;  %684 = vmatpush.msra.mxu1 %v175_v55  ;;  %v56_v55 = vld [vmem:[%s3892_s1 + $0xb0] sm:$0xff] }
  0xa5   :  { %v307_v57 = vld [vmem:[%s3892_s1 + $0x888] sm:$0xff]  ;;  %704 = vmatpush.msra.mxu2 %v239_v56  ;;  %v124_v56 = vld [vmem:[%s3892_s1 + $0x2d0] sm:$0xff] }
  0xa6   :  { %v107_v58 = vld [vmem:[%s3892_s1 + $0x248] sm:$0xff]  ;;  %723 = vmatpush.msra.mxu3 %v307_v57 }
  0xa7   :  { %v171_v59 = vld [vmem:[%s3892_s1 + $0x448] sm:$0xff]  ;;  %665 = vmatpush.msra.mxu0 %v107_v58 }
  0xa8   :  { %v235_v60 = vld [vmem:[%s3892_s1 + $0x648] sm:$0xff]  ;;  %685 = vmatpush.msra.mxu1 %v171_v59  ;;  %v52_v59 = vld [vmem:[%s3892_s1 + $0x90] sm:$0xff] }
  0xa9   :  { %v303_v61 = vld [vmem:[%s3892_s1 + $0x868] sm:$0xff]  ;;  %705 = vmatpush.msra.mxu2 %v235_v60  ;;  %v120_v60 = vld [vmem:[%s3892_s1 + $0x2b0] sm:$0xff] }
  0xaa   :  { %v103_v62 = vld [vmem:[%s3892_s1 + $0x228] sm:$0xff]  ;;  %724 = vmatpush.msra.mxu3 %v303_v61 }
  0xab   :  { %v167_v2 = vld [vmem:[%s3892_s1 + $0x428] sm:$0xff]  ;;  %666 = vmatpush.msra.mxu0 %v103_v62 }
  0xac   :  { %v231_v3 = vld [vmem:[%s3892_s1 + $0x628] sm:$0xff]  ;;  %686 = vmatpush.msra.mxu1 %v167_v2  ;;  %v48_v2 = vld [vmem:[%s3892_s1 + $0x70] sm:$0xff] }
  0xad   :  { %v299_v4 = vld [vmem:[%s3892_s1 + $0x848] sm:$0xff]  ;;  %706 = vmatpush.msra.mxu2 %v231_v3  ;;  %v116_v3 = vld [vmem:[%s3892_s1 + $0x290] sm:$0xff] }
  0xae   :  { %v99_v5 = vld [vmem:[%s3892_s1 + $0x208] sm:$0xff]  ;;  %725 = vmatpush.msra.mxu3 %v299_v4 }
  0xaf   :  { %v163_v6 = vld [vmem:[%s3892_s1 + $0x408] sm:$0xff]  ;;  %667 = vmatpush.msra.mxu0 %v99_v5 }
  0xb0   :  { %v227_v8 = vld [vmem:[%s3892_s1 + $0x608] sm:$0xff]  ;;  %687 = vmatpush.msra.mxu1 %v163_v6  ;;  %668 = vmatmul.f32.vlgmr.msra.gmra.mxu0 %v2094_v0  ;;  %v44_v6 = vld [vmem:[%s3892_s1 + $0x50] sm:$0xff] }
  0xb1   :  { %v295_v9 = vld [vmem:[%s3892_s1 + $0x828] sm:$0xff]  ;;  %707 = vmatpush.msra.mxu2 %v227_v8  ;;  %688 = vmatmul.f32.vlgmr.msra.gmra.mxu1 %v2099_v1  ;;  %v112_v8 = vld [vmem:[%s3892_s1 + $0x270] sm:$0xff] }
  0xb2   :  { %v415_v10 = vld [vmem:[%s3892_s1 + $0xbe8] sm:$0xff]  ;;  %726 = vmatpush.msra.mxu3 %v295_v9  ;;  %708 = vmatmul.f32.vlgmr.msra.gmra.mxu2 %v2122_v7 }
  0xb3   :  { %v479_v11 = vld [vmem:[%s3892_s1 + $0xde8] sm:$0xff]  ;;  %732 = vmatpush.msrb.mxu0 %v415_v10  ;;  %772 = vmatpush.msrb.mxu2 %v96_v12  ;;  %v108_v12 = vld [vmem:[%s3892_s1 + $0x250] sm:$0xff] }
  0xb4   :  { %v291_v13 = vld [vmem:[%s3892_s1 + $0x808] sm:$0xff]  ;;  %752 = vmatpush.msrb.mxu1 %v479_v11  ;;  %v40_v11 = vld [vmem:[%s3892_s1 + $0x30] sm:$0xff] }
  0xb5   :  { %v411_v14 = vld [vmem:[%s3892_s1 + $0xbc8] sm:$0xff]  ;;  %727 = vmatpush.msra.mxu3 %v291_v13  ;;  %773 = vmatpush.msrb.mxu2 %v92_v16  ;;  %v104_v16 = vld [vmem:[%s3892_s1 + $0x230] sm:$0xff] }
  0xb6   :  { %v475_v15 = vld [vmem:[%s3892_s1 + $0xdc8] sm:$0xff]  ;;  %733 = vmatpush.msrb.mxu0 %v411_v14  ;;  %728 = vmatmul.f32.vlgmr.msra.gmra.mxu3 %v2178_v24 }
  0xb7   :  { %v407_v18 = vld [vmem:[%s3892_s1 + $0xba8] sm:$0xff]  ;;  %753 = vmatpush.msrb.mxu1 %v475_v15  ;;  %792 = vmatpush.msrb.mxu3 %v160_v17  ;;  %v36_v15 = vld [vmem:[%s3892_s1 + $0x10] sm:$0xff] }
  0xb8   :  { %v471_v20 = vld [vmem:[%s3892_s1 + $0xda8] sm:$0xff]  ;;  %734 = vmatpush.msrb.mxu0 %v407_v18  ;;  %774 = vmatpush.msrb.mxu2 %v88_v21  ;;  %v288_v17 = vld [vmem:[%s3892_s1 + $0x7f0] sm:$0xff] }
  0xb9   :  { %v403_v23 = vld [vmem:[%s3892_s1 + $0xb88] sm:$0xff]  ;;  %754 = vmatpush.msrb.mxu1 %v471_v20  ;;  %793 = vmatpush.msrb.mxu3 %v156_v22  ;;  %v224_v18 = vld [vmem:[%s3892_s1 + $0x5f0] sm:$0xff] }
  0xba   :  { %v467_v25 = vld [vmem:[%s3892_s1 + $0xd88] sm:$0xff]  ;;  %735 = vmatpush.msrb.mxu0 %v403_v23  ;;  %775 = vmatpush.msrb.mxu2 %v84_v26  ;;  %v352_v20 = vld [vmem:[%s3892_s1 + $0x9f0] sm:$0xff] }
  0xbb   :  { %v399_v28 = vld [vmem:[%s3892_s1 + $0xb68] sm:$0xff]  ;;  %755 = vmatpush.msrb.mxu1 %v467_v25  ;;  %794 = vmatpush.msrb.mxu3 %v152_v27  ;;  %v100_v21 = vld [vmem:[%s3892_s1 + $0x210] sm:$0xff] }
  0xbc   :  { %v463_v30 = vld [vmem:[%s3892_s1 + $0xd68] sm:$0xff]  ;;  %736 = vmatpush.msrb.mxu0 %v399_v28  ;;  %776 = vmatpush.msrb.mxu2 %v80_v31  ;;  %v220_v22 = vld [vmem:[%s3892_s1 + $0x5d0] sm:$0xff] }
  0xbd   :  { %v395_v33 = vld [vmem:[%s3892_s1 + $0xb48] sm:$0xff]  ;;  %756 = vmatpush.msrb.mxu1 %v463_v30  ;;  %795 = vmatpush.msrb.mxu3 %v148_v32  ;;  %v284_v23 = vld [vmem:[%s3892_s1 + $0x7d0] sm:$0xff] }
  0xbe   :  { %v459_v34 = vld [vmem:[%s3892_s1 + $0xd48] sm:$0xff]  ;;  %737 = vmatpush.msrb.mxu0 %v395_v33  ;;  %777 = vmatpush.msrb.mxu2 %v76_v35  ;;  %v348_v25 = vld [vmem:[%s3892_s1 + $0x9d0] sm:$0xff] }
  0xbf   :  { %v391_v37 = vld [vmem:[%s3892_s1 + $0xb28] sm:$0xff]  ;;  %757 = vmatpush.msrb.mxu1 %v459_v34  ;;  %796 = vmatpush.msrb.mxu3 %v144_v36  ;;  %v416_v26 = vld [vmem:[%s3892_s1 + $0xbf0] sm:$0xff] }
  0xc0   :  { %v455_v38 = vld [vmem:[%s3892_s1 + $0xd28] sm:$0xff]  ;;  %738 = vmatpush.msrb.mxu0 %v391_v37  ;;  %778 = vmatpush.msrb.mxu2 %v72_v39  ;;  %v216_v27 = vld [vmem:[%s3892_s1 + $0x5b0] sm:$0xff] }
  0xc1   :  { %v387_v41 = vld [vmem:[%s3892_s1 + $0xb08] sm:$0xff]  ;;  %758 = vmatpush.msrb.mxu1 %v455_v38  ;;  %797 = vmatpush.msrb.mxu3 %v140_v40  ;;  %v280_v28 = vld [vmem:[%s3892_s1 + $0x7b0] sm:$0xff] }
  0xc2   :  { %v451_v42 = vld [vmem:[%s3892_s1 + $0xd08] sm:$0xff]  ;;  %739 = vmatpush.msrb.mxu0 %v387_v41  ;;  %779 = vmatpush.msrb.mxu2 %v68_v43  ;;  %v344_v30 = vld [vmem:[%s3892_s1 + $0x9b0] sm:$0xff] }
  0xc3   :  { %v383_v45 = vld [vmem:[%s3892_s1 + $0xae8] sm:$0xff]  ;;  %759 = vmatpush.msrb.mxu1 %v451_v42  ;;  %798 = vmatpush.msrb.mxu3 %v136_v44  ;;  %v412_v31 = vld [vmem:[%s3892_s1 + $0xbd0] sm:$0xff] }
  0xc4   :  { %v447_v46 = vld [vmem:[%s3892_s1 + $0xce8] sm:$0xff]  ;;  %740 = vmatpush.msrb.mxu0 %v383_v45  ;;  %780 = vmatpush.msrb.mxu2 %v64_v47  ;;  %v212_v32 = vld [vmem:[%s3892_s1 + $0x590] sm:$0xff] }
  0xc5   :  { %v379_v49 = vld [vmem:[%s3892_s1 + $0xac8] sm:$0xff]  ;;  %760 = vmatpush.msrb.mxu1 %v447_v46  ;;  %799 = vmatpush.msrb.mxu3 %v132_v48  ;;  %v276_v33 = vld [vmem:[%s3892_s1 + $0x790] sm:$0xff] }
  0xc6   :  { %v443_v50 = vld [vmem:[%s3892_s1 + $0xcc8] sm:$0xff]  ;;  %741 = vmatpush.msrb.mxu0 %v379_v49  ;;  %781 = vmatpush.msrb.mxu2 %v60_v51  ;;  %v340_v34 = vld [vmem:[%s3892_s1 + $0x990] sm:$0xff] }
  0xc7   :  { %v375_v53 = vld [vmem:[%s3892_s1 + $0xaa8] sm:$0xff]  ;;  %761 = vmatpush.msrb.mxu1 %v443_v50  ;;  %800 = vmatpush.msrb.mxu3 %v128_v52  ;;  %v408_v35 = vld [vmem:[%s3892_s1 + $0xbb0] sm:$0xff] }
  0xc8   :  { %v439_v54 = vld [vmem:[%s3892_s1 + $0xca8] sm:$0xff]  ;;  %742 = vmatpush.msrb.mxu0 %v375_v53  ;;  %782 = vmatpush.msrb.mxu2 %v56_v55  ;;  %v208_v36 = vld [vmem:[%s3892_s1 + $0x570] sm:$0xff] }
  0xc9   :  { %v371_v57 = vld [vmem:[%s3892_s1 + $0xa88] sm:$0xff]  ;;  %762 = vmatpush.msrb.mxu1 %v439_v54  ;;  %801 = vmatpush.msrb.mxu3 %v124_v56  ;;  %v272_v37 = vld [vmem:[%s3892_s1 + $0x770] sm:$0xff] }
  0xca   :  { %v435_v58 = vld [vmem:[%s3892_s1 + $0xc88] sm:$0xff]  ;;  %743 = vmatpush.msrb.mxu0 %v371_v57  ;;  %783 = vmatpush.msrb.mxu2 %v52_v59  ;;  %v336_v38 = vld [vmem:[%s3892_s1 + $0x970] sm:$0xff] }
  0xcb   :  { %v367_v61 = vld [vmem:[%s3892_s1 + $0xa68] sm:$0xff]  ;;  %763 = vmatpush.msrb.mxu1 %v435_v58  ;;  %802 = vmatpush.msrb.mxu3 %v120_v60  ;;  %v404_v39 = vld [vmem:[%s3892_s1 + $0xb90] sm:$0xff] }
  0xcc   :  { %v431_v62 = vld [vmem:[%s3892_s1 + $0xc68] sm:$0xff]  ;;  %744 = vmatpush.msrb.mxu0 %v367_v61  ;;  %784 = vmatpush.msrb.mxu2 %v48_v2  ;;  %v204_v40 = vld [vmem:[%s3892_s1 + $0x550] sm:$0xff] }
  0xcd   :  { %v363_v4 = vld [vmem:[%s3892_s1 + $0xa48] sm:$0xff]  ;;  %764 = vmatpush.msrb.mxu1 %v431_v62  ;;  %803 = vmatpush.msrb.mxu3 %v116_v3  ;;  %v268_v41 = vld [vmem:[%s3892_s1 + $0x750] sm:$0xff] }
  0xce   :  { %v427_v5 = vld [vmem:[%s3892_s1 + $0xc48] sm:$0xff]  ;;  %745 = vmatpush.msrb.mxu0 %v363_v4  ;;  %785 = vmatpush.msrb.mxu2 %v44_v6  ;;  %v332_v42 = vld [vmem:[%s3892_s1 + $0x950] sm:$0xff] }
  0xcf   :  { %v359_v9 = vld [vmem:[%s3892_s1 + $0xa28] sm:$0xff]  ;;  %765 = vmatpush.msrb.mxu1 %v427_v5  ;;  %804 = vmatpush.msrb.mxu3 %v112_v8  ;;  %v400_v43 = vld [vmem:[%s3892_s1 + $0xb70] sm:$0xff] }
  0xd0   :  { %v423_v10 = vld [vmem:[%s3892_s1 + $0xc28] sm:$0xff]  ;;  %746 = vmatpush.msrb.mxu0 %v359_v9  ;;  %786 = vmatpush.msrb.mxu2 %v40_v11  ;;  %v200_v44 = vld [vmem:[%s3892_s1 + $0x530] sm:$0xff] }
  0xd1   :  { %v355_v13 = vld [vmem:[%s3892_s1 + $0xa08] sm:$0xff]  ;;  %766 = vmatpush.msrb.mxu1 %v423_v10  ;;  %805 = vmatpush.msrb.mxu3 %v108_v12  ;;  %v264_v45 = vld [vmem:[%s3892_s1 + $0x730] sm:$0xff] }
  0xd2   :  { %v419_v14 = vld [vmem:[%s3892_s1 + $0xc08] sm:$0xff]  ;;  %747 = vmatpush.msrb.mxu0 %v355_v13  ;;  %787 = vmatpush.msrb.mxu2 %v36_v15  ;;  %v328_v46 = vld [vmem:[%s3892_s1 + $0x930] sm:$0xff] }
  0xd3   :  { %767 = vmatpush.msrb.mxu1 %v419_v14  ;;  %806 = vmatpush.msrb.mxu3 %v104_v16  ;;  %v396_v47 = vld [vmem:[%s3892_s1 + $0xb50] sm:$0xff] }
  0xd4   :  { %748 = vmatmul.f32.vlgmr.msrb.gmra.mxu0 %v2197_v29  ;;  %852 = vmatpush.msra.mxu2 %v352_v20  ;;  %v196_v48 = vld [vmem:[%s3892_s1 + $0x510] sm:$0xff] }
  0xd5   :  { %832 = vmatpush.msra.mxu1 %v288_v17  ;;  %812 = vmatpush.msra.mxu0 %v224_v18  ;;  %v260_v49 = vld [vmem:[%s3892_s1 + $0x710] sm:$0xff] }
  0xd6   :  { %807 = vmatpush.msrb.mxu3 %v100_v21  ;;  %768 = vmatmul.f32.vlgmr.msrb.gmra.mxu1 %v2161_v19  ;;  %v324_v50 = vld [vmem:[%s3892_s1 + $0x910] sm:$0xff] }
  0xd7   :  { %813 = vmatpush.msra.mxu0 %v220_v22  ;;  %833 = vmatpush.msra.mxu1 %v284_v23  ;;  %v392_v51 = vld [vmem:[%s3892_s1 + $0xb30] sm:$0xff] }
  0xd8   :  { %853 = vmatpush.msra.mxu2 %v348_v25  ;;  %872 = vmatpush.msra.mxu3 %v416_v26  ;;  %v192_v52 = vld [vmem:[%s3892_s1 + $0x4f0] sm:$0xff] }
  0xd9   :  { %814 = vmatpush.msra.mxu0 %v216_v27  ;;  %834 = vmatpush.msra.mxu1 %v280_v28  ;;  %v256_v53 = vld [vmem:[%s3892_s1 + $0x6f0] sm:$0xff]  ;;  %v97_v27 = vld [vmem:[%s3892_s1 + $0x1f8] sm:$0xff] }
  0xda   :  { %854 = vmatpush.msra.mxu2 %v344_v30  ;;  %873 = vmatpush.msra.mxu3 %v412_v31  ;;  %v320_v54 = vld [vmem:[%s3892_s1 + $0x8f0] sm:$0xff]  ;;  %v161_v28 = vld [vmem:[%s3892_s1 + $0x3f8] sm:$0xff] }
  0xdb   :  { %815 = vmatpush.msra.mxu0 %v212_v32  ;;  %835 = vmatpush.msra.mxu1 %v276_v33  ;;  %v388_v55 = vld [vmem:[%s3892_s1 + $0xb10] sm:$0xff]  ;;  %v93_v32 = vld [vmem:[%s3892_s1 + $0x1d8] sm:$0xff] }
  0xdc   :  { %855 = vmatpush.msra.mxu2 %v340_v34  ;;  %874 = vmatpush.msra.mxu3 %v408_v35  ;;  %v188_v56 = vld [vmem:[%s3892_s1 + $0x4d0] sm:$0xff]  ;;  %v157_v33 = vld [vmem:[%s3892_s1 + $0x3d8] sm:$0xff] }
  0xdd   :  { %816 = vmatpush.msra.mxu0 %v208_v36  ;;  %836 = vmatpush.msra.mxu1 %v272_v37  ;;  %v252_v57 = vld [vmem:[%s3892_s1 + $0x6d0] sm:$0xff]  ;;  %v225_v34 = vld [vmem:[%s3892_s1 + $0x5f8] sm:$0xff] }
  0xde   :  { %856 = vmatpush.msra.mxu2 %v336_v38  ;;  %875 = vmatpush.msra.mxu3 %v404_v39  ;;  %v316_v58 = vld [vmem:[%s3892_s1 + $0x8d0] sm:$0xff]  ;;  %v89_v35 = vld [vmem:[%s3892_s1 + $0x1b8] sm:$0xff] }
  0xdf   :  { %817 = vmatpush.msra.mxu0 %v204_v40  ;;  %837 = vmatpush.msra.mxu1 %v268_v41  ;;  %v384_v59 = vld [vmem:[%s3892_s1 + $0xaf0] sm:$0xff]  ;;  %v153_v36 = vld [vmem:[%s3892_s1 + $0x3b8] sm:$0xff] }
  0xe0   :  { %857 = vmatpush.msra.mxu2 %v332_v42  ;;  %876 = vmatpush.msra.mxu3 %v400_v43  ;;  %v184_v60 = vld [vmem:[%s3892_s1 + $0x4b0] sm:$0xff]  ;;  %v221_v37 = vld [vmem:[%s3892_s1 + $0x5d8] sm:$0xff] }
  0xe1   :  { %818 = vmatpush.msra.mxu0 %v200_v44  ;;  %838 = vmatpush.msra.mxu1 %v264_v45  ;;  %v248_v61 = vld [vmem:[%s3892_s1 + $0x6b0] sm:$0xff]  ;;  %v85_v39 = vld [vmem:[%s3892_s1 + $0x198] sm:$0xff] }
  0xe2   :  { %858 = vmatpush.msra.mxu2 %v328_v46  ;;  %877 = vmatpush.msra.mxu3 %v396_v47  ;;  %v312_v62 = vld [vmem:[%s3892_s1 + $0x8b0] sm:$0xff]  ;;  %v217_v40 = vld [vmem:[%s3892_s1 + $0x5b8] sm:$0xff] }
  0xe3   :  { %819 = vmatpush.msra.mxu0 %v196_v48  ;;  %839 = vmatpush.msra.mxu1 %v260_v49  ;;  %v380_v2 = vld [vmem:[%s3892_s1 + $0xad0] sm:$0xff]  ;;  %v81_v42 = vld [vmem:[%s3892_s1 + $0x178] sm:$0xff] }
  0xe4   :  { %859 = vmatpush.msra.mxu2 %v324_v50  ;;  %878 = vmatpush.msra.mxu3 %v392_v51  ;;  %v180_v3 = vld [vmem:[%s3892_s1 + $0x490] sm:$0xff]  ;;  %v145_v43 = vld [vmem:[%s3892_s1 + $0x378] sm:$0xff] }
  0xe5   :  { %820 = vmatpush.msra.mxu0 %v192_v52  ;;  %840 = vmatpush.msra.mxu1 %v256_v53  ;;  %v244_v4 = vld [vmem:[%s3892_s1 + $0x690] sm:$0xff]  ;;  %v213_v44 = vld [vmem:[%s3892_s1 + $0x598] sm:$0xff] }
  0xe6   :  { %860 = vmatpush.msra.mxu2 %v320_v54  ;;  %879 = vmatpush.msra.mxu3 %v388_v55  ;;  %v308_v5 = vld [vmem:[%s3892_s1 + $0x890] sm:$0xff]  ;;  %v77_v46 = vld [vmem:[%s3892_s1 + $0x158] sm:$0xff] }
  0xe7   :  { %821 = vmatpush.msra.mxu0 %v188_v56  ;;  %841 = vmatpush.msra.mxu1 %v252_v57  ;;  %v376_v6 = vld [vmem:[%s3892_s1 + $0xab0] sm:$0xff]  ;;  %v141_v47 = vld [vmem:[%s3892_s1 + $0x358] sm:$0xff] }
  0xe8   :  { %861 = vmatpush.msra.mxu2 %v316_v58  ;;  %880 = vmatpush.msra.mxu3 %v384_v59  ;;  %v176_v8 = vld [vmem:[%s3892_s1 + $0x470] sm:$0xff]  ;;  %v73_v49 = vld [vmem:[%s3892_s1 + $0x138] sm:$0xff] }
  0xe9   :  { %822 = vmatpush.msra.mxu0 %v184_v60  ;;  %842 = vmatpush.msra.mxu1 %v248_v61  ;;  %v240_v9 = vld [vmem:[%s3892_s1 + $0x670] sm:$0xff]  ;;  %v205_v50 = vld [vmem:[%s3892_s1 + $0x558] sm:$0xff] }
  0xea   :  { %862 = vmatpush.msra.mxu2 %v312_v62  ;;  %881 = vmatpush.msra.mxu3 %v380_v2  ;;  %v304_v10 = vld [vmem:[%s3892_s1 + $0x870] sm:$0xff]  ;;  %v69_v51 = vld [vmem:[%s3892_s1 + $0x118] sm:$0xff] }
  0xeb   :  { %823 = vmatpush.msra.mxu0 %v180_v3  ;;  %843 = vmatpush.msra.mxu1 %v244_v4  ;;  %v372_v11 = vld [vmem:[%s3892_s1 + $0xa90] sm:$0xff]  ;;  %v133_v52 = vld [vmem:[%s3892_s1 + $0x318] sm:$0xff] }
  0xec   :  { %863 = vmatpush.msra.mxu2 %v308_v5  ;;  %882 = vmatpush.msra.mxu3 %v376_v6  ;;  %v172_v12 = vld [vmem:[%s3892_s1 + $0x450] sm:$0xff]  ;;  %v201_v53 = vld [vmem:[%s3892_s1 + $0x538] sm:$0xff] }
  0xed   :  { %v236_v13 = vld [vmem:[%s3892_s1 + $0x650] sm:$0xff]  ;;  %824 = vmatpush.msra.mxu0 %v176_v8  ;;  %844 = vmatpush.msra.mxu1 %v240_v9  ;;  %v65_v54 = vld [vmem:[%s3892_s1 + $0xf8] sm:$0xff] }
  0xee   :  { %v300_v14 = vld [vmem:[%s3892_s1 + $0x850] sm:$0xff]  ;;  %864 = vmatpush.msra.mxu2 %v304_v10  ;;  %883 = vmatpush.msra.mxu3 %v372_v11  ;;  %v129_v55 = vld [vmem:[%s3892_s1 + $0x2f8] sm:$0xff] }
  0xef   :  { %v368_v15 = vld [vmem:[%s3892_s1 + $0xa70] sm:$0xff]  ;;  %825 = vmatpush.msra.mxu0 %v172_v12  ;;  %845 = vmatpush.msra.mxu1 %v236_v13  ;;  %v197_v56 = vld [vmem:[%s3892_s1 + $0x518] sm:$0xff] }
  0xf0   :  { %v168_v16 = vld [vmem:[%s3892_s1 + $0x430] sm:$0xff]  ;;  %865 = vmatpush.msra.mxu2 %v300_v14  ;;  %884 = vmatpush.msra.mxu3 %v368_v15  ;;  %v61_v58 = vld [vmem:[%s3892_s1 + $0xd8] sm:$0xff] }
  0xf1   :  { %v232_v17 = vld [vmem:[%s3892_s1 + $0x630] sm:$0xff]  ;;  %826 = vmatpush.msra.mxu0 %v168_v16  ;;  %788 = vmatmul.f32.vlgmr.msrb.gmra.mxu2 %v2089_v63  ;;  %v125_v59 = vld [vmem:[%s3892_s1 + $0x2d8] sm:$0xff] }
  0xf2   :  { %v296_v18 = vld [vmem:[%s3892_s1 + $0x830] sm:$0xff]  ;;  %846 = vmatpush.msra.mxu1 %v232_v17  ;;  %808 = vmatmul.f32.vlgmr.msrb.gmra.mxu3 %v2094_v0  ;;  %v149_v0 = vld [vmem:[%s3892_s1 + $0x398] sm:$0xff] }
  0xf3   :  { %v364_v20 = vld [vmem:[%s3892_s1 + $0xa50] sm:$0xff]  ;;  %866 = vmatpush.msra.mxu2 %v296_v18  ;;  %v193_v60 = vld [vmem:[%s3892_s1 + $0x4f8] sm:$0xff] }
  0xf4   :  { %v164_v21 = vld [vmem:[%s3892_s1 + $0x410] sm:$0xff]  ;;  %885 = vmatpush.msra.mxu3 %v364_v20  ;;  %v57_v62 = vld [vmem:[%s3892_s1 + $0xb8] sm:$0xff] }
  0xf5   :  { %v228_v22 = vld [vmem:[%s3892_s1 + $0x610] sm:$0xff]  ;;  %827 = vmatpush.msra.mxu0 %v164_v21  ;;  %v121_v2 = vld [vmem:[%s3892_s1 + $0x2b8] sm:$0xff] }
  0xf6   :  { %v292_v23 = vld [vmem:[%s3892_s1 + $0x810] sm:$0xff]  ;;  %847 = vmatpush.msra.mxu1 %v228_v22  ;;  %828 = vmatmul.f32.vlgmr.msra.gmra.mxu0 %v2099_v1  ;;  %v137_v1 = vld [vmem:[%s3892_s1 + $0x338] sm:$0xff] }
  0xf7   :  { %v360_v25 = vld [vmem:[%s3892_s1 + $0xa30] sm:$0xff]  ;;  %867 = vmatpush.msra.mxu2 %v292_v23  ;;  %848 = vmatmul.f32.vlgmr.msra.gmra.mxu1 %v2122_v7  ;;  %v189_v3 = vld [vmem:[%s3892_s1 + $0x4d8] sm:$0xff] }
  0xf8   :  { %v480_v26 = vld [vmem:[%s3892_s1 + $0xdf0] sm:$0xff]  ;;  %886 = vmatpush.msra.mxu3 %v360_v25  ;;  %912 = vmatpush.msrb.mxu1 %v97_v27  ;;  %v53_v5 = vld [vmem:[%s3892_s1 + $0x98] sm:$0xff] }
  0xf9   :  { %v356_v30 = vld [vmem:[%s3892_s1 + $0xa10] sm:$0xff]  ;;  %892 = vmatpush.msrb.mxu0 %v480_v26  ;;  %932 = vmatpush.msrb.mxu2 %v161_v28  ;;  %v117_v6 = vld [vmem:[%s3892_s1 + $0x298] sm:$0xff] }
  0xfa   :  { %v476_v31 = vld [vmem:[%s3892_s1 + $0xdd0] sm:$0xff]  ;;  %887 = vmatpush.msra.mxu3 %v356_v30  ;;  %913 = vmatpush.msrb.mxu1 %v93_v32  ;;  %v185_v8 = vld [vmem:[%s3892_s1 + $0x4b8] sm:$0xff] }
  0xfb   :  { %893 = vmatpush.msrb.mxu0 %v476_v31  ;;  %v472_v63 = vld [vmem:[%s3892_s1 + $0xdb0] sm:$0xff]  ;;  %933 = vmatpush.msrb.mxu2 %v157_v33  ;;  %v49_v10 = vld [vmem:[%s3892_s1 + $0x78] sm:$0xff] }
  0xfc   :  { %952 = vmatpush.msrb.mxu3 %v225_v34  ;;  %v468_v38 = vld [vmem:[%s3892_s1 + $0xd90] sm:$0xff]  ;;  %914 = vmatpush.msrb.mxu1 %v89_v35  ;;  %v113_v11 = vld [vmem:[%s3892_s1 + $0x278] sm:$0xff] }
  0xfd   :  { %894 = vmatpush.msrb.mxu0 %v472_v63  ;;  %934 = vmatpush.msrb.mxu2 %v153_v36  ;;  %v464_v41 = vld [vmem:[%s3892_s1 + $0xd70] sm:$0xff]  ;;  %v181_v12 = vld [vmem:[%s3892_s1 + $0x498] sm:$0xff] }
  0xfe   :  { %953 = vmatpush.msrb.mxu3 %v221_v37  ;;  %915 = vmatpush.msrb.mxu1 %v85_v39  ;;  %v460_v45 = vld [vmem:[%s3892_s1 + $0xd50] sm:$0xff]  ;;  %v45_v14 = vld [vmem:[%s3892_s1 + $0x58] sm:$0xff] }
  0xff   :  { %895 = vmatpush.msrb.mxu0 %v468_v38  ;;  %935 = vmatpush.msrb.mxu2 %v149_v0  ;;  %v456_v48 = vld [vmem:[%s3892_s1 + $0xd30] sm:$0xff]  ;;  %v109_v15 = vld [vmem:[%s3892_s1 + $0x258] sm:$0xff] }
 0x100   :  { %954 = vmatpush.msrb.mxu3 %v217_v40  ;;  %868 = vmatmul.f32.vlgmr.msra.gmra.mxu2 %v2178_v24  ;;  %v209_v24 = vld [vmem:[%s3892_s1 + $0x578] sm:$0xff]  ;;  %v448_v7 = vld [vmem:[%s3892_s1 + $0xcf0] sm:$0xff] }
 0x101   :  { %896 = vmatpush.msrb.mxu0 %v464_v41  ;;  %916 = vmatpush.msrb.mxu1 %v81_v42  ;;  %v444_v57 = vld [vmem:[%s3892_s1 + $0xcd0] sm:$0xff]  ;;  %v177_v16 = vld [vmem:[%s3892_s1 + $0x478] sm:$0xff] }
 0x102   :  { %936 = vmatpush.msrb.mxu2 %v145_v43  ;;  %955 = vmatpush.msrb.mxu3 %v213_v44  ;;  %v440_v61 = vld [vmem:[%s3892_s1 + $0xcb0] sm:$0xff]  ;;  %v41_v18 = vld [vmem:[%s3892_s1 + $0x38] sm:$0xff] }
 0x103   :  { %888 = vmatmul.f32.vlgmr.msra.gmra.mxu3 %v2197_v29  ;;  %897 = vmatpush.msrb.mxu0 %v460_v45  ;;  %v452_v29 = vld [vmem:[%s3892_s1 + $0xd10] sm:$0xff]  ;;  %v105_v20 = vld [vmem:[%s3892_s1 + $0x238] sm:$0xff] }
 0x104   :  { %917 = vmatpush.msrb.mxu1 %v77_v46  ;;  %937 = vmatpush.msrb.mxu2 %v141_v47  ;;  %v436_v4 = vld [vmem:[%s3892_s1 + $0xc90] sm:$0xff]  ;;  %v173_v21 = vld [vmem:[%s3892_s1 + $0x458] sm:$0xff] }
 0x105   :  { %956 = vmatpush.msrb.mxu3 %v209_v24  ;;  %898 = vmatpush.msrb.mxu0 %v456_v48  ;;  %v432_v9 = vld [vmem:[%s3892_s1 + $0xc70] sm:$0xff]  ;;  %v37_v23 = vld [vmem:[%s3892_s1 + $0x18] sm:$0xff] }
 0x106   :  { %918 = vmatpush.msrb.mxu1 %v73_v49  ;;  %938 = vmatpush.msrb.mxu2 %v137_v1  ;;  %v428_v13 = vld [vmem:[%s3892_s1 + $0xc50] sm:$0xff]  ;;  %v101_v25 = vld [vmem:[%s3892_s1 + $0x218] sm:$0xff] }
 0x107   :  { %957 = vmatpush.msrb.mxu3 %v205_v50  ;;  %899 = vmatpush.msrb.mxu0 %v452_v29  ;;  %v424_v17 = vld [vmem:[%s3892_s1 + $0xc30] sm:$0xff]  ;;  %v169_v26 = vld [vmem:[%s3892_s1 + $0x438] sm:$0xff] }
 0x108   :  { %919 = vmatpush.msrb.mxu1 %v69_v51  ;;  %939 = vmatpush.msrb.mxu2 %v133_v52  ;;  %v420_v22 = vld [vmem:[%s3892_s1 + $0xc10] sm:$0xff]  ;;  %v353_v27 = vld [vmem:[%s3892_s1 + $0x9f8] sm:$0xff] }
 0x109   :  { %958 = vmatpush.msrb.mxu3 %v201_v53  ;;  %900 = vmatpush.msrb.mxu0 %v448_v7  ;;  %v289_v28 = vld [vmem:[%s3892_s1 + $0x7f8] sm:$0xff] }
 0x10a   :  { %920 = vmatpush.msrb.mxu1 %v65_v54  ;;  %940 = vmatpush.msrb.mxu2 %v129_v55  ;;  %v417_v30 = vld [vmem:[%s3892_s1 + $0xbf8] sm:$0xff] }
 0x10b   :  { %959 = vmatpush.msrb.mxu3 %v197_v56  ;;  %901 = vmatpush.msrb.mxu0 %v444_v57  ;;  %v165_v31 = vld [vmem:[%s3892_s1 + $0x418] sm:$0xff] }
 0x10c   :  { %921 = vmatpush.msrb.mxu1 %v61_v58  ;;  %941 = vmatpush.msrb.mxu2 %v125_v59  ;;  %v349_v32 = vld [vmem:[%s3892_s1 + $0x9d8] sm:$0xff] }
 0x10d   :  { %960 = vmatpush.msrb.mxu3 %v193_v60  ;;  %902 = vmatpush.msrb.mxu0 %v440_v61  ;;  %v285_v33 = vld [vmem:[%s3892_s1 + $0x7d8] sm:$0xff] }
 0x10e   :  { %922 = vmatpush.msrb.mxu1 %v57_v62  ;;  %942 = vmatpush.msrb.mxu2 %v121_v2  ;;  %v413_v34 = vld [vmem:[%s3892_s1 + $0xbd8] sm:$0xff] }
 0x10f   :  { %961 = vmatpush.msrb.mxu3 %v189_v3  ;;  %903 = vmatpush.msrb.mxu0 %v436_v4  ;;  %v481_v63 = vld [vmem:[%s3892_s1 + $0xdf8] sm:$0xff] }
 0x110   :  { %923 = vmatpush.msrb.mxu1 %v53_v5  ;;  %943 = vmatpush.msrb.mxu2 %v117_v6  ;;  %v345_v35 = vld [vmem:[%s3892_s1 + $0x9b8] sm:$0xff] }
 0x111   :  { %962 = vmatpush.msrb.mxu3 %v185_v8  ;;  %904 = vmatpush.msrb.mxu0 %v432_v9  ;;  %v409_v36 = vld [vmem:[%s3892_s1 + $0xbb8] sm:$0xff] }
 0x112   :  { %924 = vmatpush.msrb.mxu1 %v49_v10  ;;  %944 = vmatpush.msrb.mxu2 %v113_v11  ;;  %v477_v37 = vld [vmem:[%s3892_s1 + $0xdd8] sm:$0xff]  ;;  %v509_v11 = vpop.f32.mrf.mxu0 }
 0x113   :  { %963 = vmatpush.msrb.mxu3 %v181_v12  ;;  %905 = vmatpush.msrb.mxu0 %v428_v13  ;;  %v341_v38 = vld [vmem:[%s3892_s1 + $0x998] sm:$0xff] }
 0x114   :  { %925 = vmatpush.msrb.mxu1 %v45_v14  ;;  %945 = vmatpush.msrb.mxu2 %v109_v15  ;;  %v277_v39 = vld [vmem:[%s3892_s1 + $0x798] sm:$0xff]  ;;  %v1631_v14 = vld [vmem:[%s3891_s0 + $0x8] sm:$0xff] }
 0x115   :  { %964 = vmatpush.msrb.mxu3 %v177_v16  ;;  %906 = vmatpush.msrb.mxu0 %v424_v17  ;;  %v405_v0 = vld [vmem:[%s3892_s1 + $0xb98] sm:$0xff] }
 0x116   :  { %926 = vmatpush.msrb.mxu1 %v41_v18  ;;  %946 = vmatpush.msrb.mxu2 %v105_v20  ;;  %v473_v40 = vld [vmem:[%s3892_s1 + $0xdb8] sm:$0xff]  ;;  %v529_v20 = vpop.f32.mrf.mxu1 }
 0x117   :  { %965 = vmatpush.msrb.mxu3 %v173_v21  ;;  %907 = vmatpush.msrb.mxu0 %v420_v22  ;;  %v337_v41 = vld [vmem:[%s3892_s1 + $0x978] sm:$0xff]  ;;  %v1632_v21 = vld [vmem:[%s3891_s0 + $0x10] sm:$0xff] }
 0x118   :  { %927 = vmatpush.msrb.mxu1 %v37_v23  ;;  %947 = vmatpush.msrb.mxu2 %v101_v25  ;;  %v273_v42 = vld [vmem:[%s3892_s1 + $0x778] sm:$0xff] }
 0x119   :  { %966 = vmatpush.msrb.mxu3 %v169_v26  ;;  %908 = vmatmul.f32.vlgmr.msrb.gmra.mxu0 %v2161_v19  ;;  %v281_v19 = vld [vmem:[%s3892_s1 + $0x7b8] sm:$0xff] }
 0x11a   :  { %992 = vmatpush.msra.mxu1 %v353_v27  ;;  %972 = vmatpush.msra.mxu0 %v289_v28  ;;  %v401_v43 = vld [vmem:[%s3892_s1 + $0xb78] sm:$0xff]  ;;  %v3099_v27 = vld [vmem:[%s3893_s2] sm:$0xf]  ;;  %v3101_v28 = vpop.f32.mrf.mxu3  ;;  %s1618_s2 = sshll.u32 %s1664_s15, 4  ;;  %s1619_s2 = int_to_ptr.vmem [resolvable:$true] %s1618_s2 }
 0x11b   :  { %1012 = vmatpush.msra.mxu2 %v417_v30  ;;  %967 = vmatpush.msrb.mxu3 %v165_v31  ;;  %v469_v44 = vld [vmem:[%s3892_s1 + $0xd98] sm:$0xff]  ;;  %v1633_v30 = vld [vmem:[%s3891_s0] sm:$0xff] }
 0x11c   :  { %993 = vmatpush.msra.mxu1 %v349_v32  ;;  %973 = vmatpush.msra.mxu0 %v285_v33  ;;  %v333_v45 = vld [vmem:[%s3892_s1 + $0x958] sm:$0xff] }
 0x11d   :  { %1013 = vmatpush.msra.mxu2 %v413_v34  ;;  %1032 = vmatpush.msra.mxu3 %v481_v63  ;;  %v269_v46 = vld [vmem:[%s3892_s1 + $0x758] sm:$0xff]  ;;  %v549_v63 = vpop.f32.mrf.mxu2 }
 0x11e   :  { %994 = vmatpush.msra.mxu1 %v345_v35  ;;  %974 = vmatpush.msra.mxu0 %v281_v19  ;;  %v397_v47 = vld [vmem:[%s3892_s1 + $0xb58] sm:$0xff]  ;;  %v1101_v35 = vld [vmem:[%s3894_s3 + $0x168] sm:$0xff]  ;;  %v484_v19 = vperm.slane %v3099_v27, 0 }
 0x11f   :  { %1014 = vmatpush.msra.mxu2 %v409_v36  ;;  %1033 = vmatpush.msra.mxu3 %v477_v37  ;;  %v465_v24 = vld [vmem:[%s3892_s1 + $0xd78] sm:$0xff]  ;;  %v1149_v36 = vld [vmem:[%s3894_s3 + $0x2e8] sm:$0xff] }
 0x120   :  { %995 = vmatpush.msra.mxu1 %v341_v38  ;;  %975 = vmatpush.msra.mxu0 %v277_v39  ;;  %v329_v48 = vld [vmem:[%s3892_s1 + $0x938] sm:$0xff]  ;;  %v3128_v38 = vpop.f32.mrf.mxu0  ;;  %v1634_v39 = vld [vmem:[%s3891_s0 + $0x28] sm:$0xff] }
 0x121   :  { %1015 = vmatpush.msra.mxu2 %v405_v0  ;;  %1034 = vmatpush.msra.mxu3 %v473_v40  ;;  %v265_v49 = vld [vmem:[%s3892_s1 + $0x738] sm:$0xff]  ;;  %v1098_v0 = vld [vmem:[%s3894_s3 + $0x150] sm:$0xff] }
 0x122   :  { %996 = vmatpush.msra.mxu1 %v337_v41  ;;  %976 = vmatpush.msra.mxu0 %v273_v42  ;;  %v393_v1 = vld [vmem:[%s3892_s1 + $0xb38] sm:$0xff]  ;;  %v1146_v40 = vld [vmem:[%s3894_s3 + $0x2d0] sm:$0xff]  ;;  %v510_v41 = vadd.f32 %v509_v11, %v484_v19  ;;  %v1125_v11 = vld [vmem:[%s3894_s3 + $0x228] sm:$0xff] }
 0x123   :  { %1016 = vmatpush.msra.mxu2 %v401_v43  ;;  %1035 = vmatpush.msra.mxu3 %v469_v44  ;;  %v461_v50 = vld [vmem:[%s3892_s1 + $0xd58] sm:$0xff]  ;;  %v1636_v43 = vld [vmem:[%s3891_s0 + $0x30] sm:$0xff] }
 0x124   :  { %997 = vmatpush.msra.mxu1 %v333_v45  ;;  %977 = vmatpush.msra.mxu0 %v269_v46  ;;  %v325_v29 = vld [vmem:[%s3892_s1 + $0x918] sm:$0xff]  ;;  %v485_v46 = vperm.slane %v3099_v27, 1  ;;  %v1110_v19 = vld [vmem:[%s3894_s3 + $0x1b0] sm:$0xff] }
 0x125   :  { %1017 = vmatpush.msra.mxu2 %v397_v47  ;;  %1036 = vmatpush.msra.mxu3 %v465_v24  ;;  %v261_v51 = vld [vmem:[%s3892_s1 + $0x718] sm:$0xff]  ;;  %v3152_v47 = vpop.f32.mrf.mxu1  ;;  %v649_v24 = vpop.f32.mrf.mxu3 }
 0x126   :  { %998 = vmatpush.msra.mxu1 %v329_v48  ;;  %v389_v52 = vld [vmem:[%s3892_s1 + $0xb18] sm:$0xff]  ;;  %978 = vmatpush.msra.mxu0 %v265_v49  ;;  %v1637_v48 = vld [vmem:[%s3891_s0 + $0x20] sm:$0xff] }
 0x127   :  { %1018 = vmatpush.msra.mxu2 %v393_v1  ;;  %v457_v53 = vld [vmem:[%s3892_s1 + $0xd38] sm:$0xff]  ;;  %1037 = vmatpush.msra.mxu3 %v461_v50  ;;  %v1092_v49 = vld [vmem:[%s3894_s3 + $0x120] sm:$0xff]  ;;  %v1197_v50 = vld [vmem:[%s3894_s3 + $0x468] sm:$0xff] }
 0x128   :  { %v321_v7 = vld [vmem:[%s3892_s1 + $0x8f8] sm:$0xff]  ;;  %999 = vmatpush.msra.mxu1 %v325_v29  ;;  %979 = vmatpush.msra.mxu0 %v261_v51  ;;  %v1140_v1 = vld [vmem:[%s3894_s3 + $0x2a0] sm:$0xff]  ;;  %v530_v29 = vadd.f32 %v529_v20, %v510_v41  ;;  %v1089_v51 = vld [vmem:[%s3894_s3 + $0x108] sm:$0xff] }
 0x129   :  { %v257_v54 = vld [vmem:[%s3892_s1 + $0x6f8] sm:$0xff]  ;;  %1019 = vmatpush.msra.mxu2 %v389_v52  ;;  %1038 = vmatpush.msra.mxu3 %v457_v53  ;;  %v1137_v52 = vld [vmem:[%s3894_s3 + $0x288] sm:$0xff]  ;;  %v650_v53 = vadd.f32 %v649_v24, %v485_v46 }
 0x12a   :  { %v385_v55 = vld [vmem:[%s3892_s1 + $0xaf8] sm:$0xff]  ;;  %1000 = vmatpush.msra.mxu1 %v321_v7  ;;  %980 = vmatpush.msra.mxu0 %v257_v54  ;;  %v3172_v7 = vpop.f32.mrf.mxu2 }
 0x12b   :  { %v453_v56 = vld [vmem:[%s3892_s1 + $0xd18] sm:$0xff]  ;;  %1020 = vmatpush.msra.mxu2 %v385_v55  ;;  %968 = vmatmul.f32.vlgmr.msrb.gmra.mxu3 %v1632_v21  ;;  %v1194_v55 = vld [vmem:[%s3894_s3 + $0x450] sm:$0xff] }
 0x12c   :  { %v317_v57 = vld [vmem:[%s3892_s1 + $0x8d8] sm:$0xff]  ;;  %1039 = vmatpush.msra.mxu3 %v453_v56  ;;  %948 = vmatmul.f32.vlgmr.msrb.gmra.mxu2 %v1631_v14  ;;  %v1086_v56 = vld [vmem:[%s3894_s3 + $0xf0] sm:$0xff] }
 0x12d   :  { %v253_v58 = vld [vmem:[%s3892_s1 + $0x6d8] sm:$0xff]  ;;  %1001 = vmatpush.msra.mxu1 %v317_v57  ;;  %v669_v54 = vpop.f32.mrf.mxu0  ;;  %v1134_v57 = vld [vmem:[%s3894_s3 + $0x270] sm:$0xff] }
 0x12e   :  { %v381_v59 = vld [vmem:[%s3892_s1 + $0xad8] sm:$0xff]  ;;  %981 = vmatpush.msra.mxu0 %v253_v58  ;;  %928 = vmatmul.f32.vlgmr.msrb.gmra.mxu1 %v1633_v30  ;;  %v1074_v14 = vld [vmem:[%s3894_s3 + $0x90] sm:$0xff] }
 0x12f   :  { %v449_v60 = vld [vmem:[%s3892_s1 + $0xcf8] sm:$0xff]  ;;  %1021 = vmatpush.msra.mxu2 %v381_v59  ;;  %v550_v59 = vadd.f32 %v549_v63, %v530_v29  ;;  %v1170_v63 = vld [vmem:[%s3894_s3 + $0x390] sm:$0xff] }
 0x130   :  { %v313_v61 = vld [vmem:[%s3892_s1 + $0x8b8] sm:$0xff]  ;;  %1040 = vmatpush.msra.mxu3 %v449_v60  ;;  %v670_v60 = vadd.f32 %v669_v54, %v650_v53  ;;  %v1158_v29 = vld [vmem:[%s3894_s3 + $0x330] sm:$0xff] }
 0x131   :  { %v249_v62 = vld [vmem:[%s3892_s1 + $0x6b8] sm:$0xff]  ;;  %1002 = vmatpush.msra.mxu1 %v313_v61  ;;  %v1138_v54 = vld [vmem:[%s3894_s3 + $0x290] sm:$0xff] }
 0x132   :  { %v377_v2 = vld [vmem:[%s3892_s1 + $0xab8] sm:$0xff]  ;;  %982 = vmatpush.msra.mxu0 %v249_v62 }
 0x133   :  { %v445_v3 = vld [vmem:[%s3892_s1 + $0xcd8] sm:$0xff]  ;;  %1022 = vmatpush.msra.mxu2 %v377_v2  ;;  %v689_v2 = vpop.f32.mrf.mxu1 }
 0x134   :  { %v309_v4 = vld [vmem:[%s3892_s1 + $0x898] sm:$0xff]  ;;  %1041 = vmatpush.msra.mxu3 %v445_v3  ;;  %v1188_v3 = vld [vmem:[%s3894_s3 + $0x420] sm:$0xff] }
 0x135   :  { %v245_v5 = vld [vmem:[%s3892_s1 + $0x698] sm:$0xff]  ;;  %1003 = vmatpush.msra.mxu1 %v309_v4  ;;  %v1080_v4 = vld [vmem:[%s3894_s3 + $0xc0] sm:$0xff] }
 0x136   :  { %v373_v6 = vld [vmem:[%s3892_s1 + $0xa98] sm:$0xff]  ;;  %983 = vmatpush.msra.mxu0 %v245_v5  ;;  %v1128_v5 = vld [vmem:[%s3894_s3 + $0x240] sm:$0xff] }
 0x137   :  { %v441_v8 = vld [vmem:[%s3892_s1 + $0xcb8] sm:$0xff]  ;;  %1023 = vmatpush.msra.mxu2 %v373_v6  ;;  %v1185_v6 = vld [vmem:[%s3894_s3 + $0x408] sm:$0xff] }
 0x138   :  { %v241_v9 = vld [vmem:[%s3892_s1 + $0x678] sm:$0xff]  ;;  %1042 = vmatpush.msra.mxu3 %v441_v8  ;;  %v570_v8 = vadd.f32 %v3101_v28, %v550_v59  ;;  %v1173_v28 = vld [vmem:[%s3894_s3 + $0x3a8] sm:$0xff] }
 0x139   :  { %v305_v10 = vld [vmem:[%s3892_s1 + $0x878] sm:$0xff]  ;;  %984 = vmatpush.msra.mxu0 %v241_v9  ;;  %v690_v9 = vadd.f32 %v689_v2, %v670_v60  ;;  %v1084_v2 = vld [vmem:[%s3894_s3 + $0xe0] sm:$0xff] }
 0x13a   :  { %v369_v12 = vld [vmem:[%s3892_s1 + $0xa78] sm:$0xff]  ;;  %1004 = vmatpush.msra.mxu1 %v305_v10  ;;  %v1077_v10 = vld [vmem:[%s3894_s3 + $0xa8] sm:$0xff] }
 0x13b   :  { %v437_v13 = vld [vmem:[%s3892_s1 + $0xc98] sm:$0xff]  ;;  %1024 = vmatpush.msra.mxu2 %v369_v12  ;;  %v709_v12 = vpop.f32.mrf.mxu2 }
 0x13c   :  { %v237_v15 = vld [vmem:[%s3892_s1 + $0x658] sm:$0xff]  ;;  %1043 = vmatpush.msra.mxu3 %v437_v13  ;;  %v1182_v13 = vld [vmem:[%s3894_s3 + $0x3f0] sm:$0xff] }
 0x13d   :  { %v301_v16 = vld [vmem:[%s3892_s1 + $0x858] sm:$0xff]  ;;  %985 = vmatpush.msra.mxu0 %v237_v15  ;;  %v1122_v15 = vld [vmem:[%s3894_s3 + $0x210] sm:$0xff] }
 0x13e   :  { %v365_v17 = vld [vmem:[%s3892_s1 + $0xa58] sm:$0xff]  ;;  %1005 = vmatpush.msra.mxu1 %v301_v16 }
 0x13f   :  { %v433_v18 = vld [vmem:[%s3892_s1 + $0xc78] sm:$0xff]  ;;  %1025 = vmatpush.msra.mxu2 %v365_v17  ;;  %v590_v17 = vadd.f32 %v3128_v38, %v570_v8  ;;  %v1245_v8 = vld [vmem:[%s3894_s3 + $0x5e8] sm:$0xff] }
 0x140   :  { %v233_v22 = vld [vmem:[%s3892_s1 + $0x638] sm:$0xff]  ;;  %1044 = vmatpush.msra.mxu3 %v433_v18  ;;  %v710_v18 = vadd.f32 %v709_v12, %v690_v9  ;;  %v1186_v9 = vld [vmem:[%s3894_s3 + $0x410] sm:$0xff] }
 0x141   :  { %v297_v23 = vld [vmem:[%s3892_s1 + $0x838] sm:$0xff]  ;;  %986 = vmatpush.msra.mxu0 %v233_v22  ;;  %v729_v22 = vpop.f32.mrf.mxu3  ;;  %v610_v30 = vadd.f32 %v3152_v47, %v590_v17  ;;  %v1161_v47 = vld [vmem:[%s3894_s3 + $0x348] sm:$0xff]  ;;  %v1242_v12 = vld [vmem:[%s3894_s3 + $0x5d0] sm:$0xff] }
 0x142   :  { %v361_v25 = vld [vmem:[%s3892_s1 + $0xa38] sm:$0xff]  ;;  %1006 = vmatpush.msra.mxu1 %v297_v23  ;;  %v1176_v23 = vld [vmem:[%s3894_s3 + $0x3c0] sm:$0xff] }
 0x143   :  { %v429_v26 = vld [vmem:[%s3892_s1 + $0xc58] sm:$0xff]  ;;  %1026 = vmatpush.msra.mxu2 %v361_v25  ;;  %v1068_v25 = vld [vmem:[%s3894_s3 + $0x60] sm:$0xff] }
 0x144   :  { %v229_v31 = vld [vmem:[%s3892_s1 + $0x618] sm:$0xff]  ;;  %1045 = vmatpush.msra.mxu3 %v429_v26  ;;  %v1116_v26 = vld [vmem:[%s3894_s3 + $0x1e0] sm:$0xff] }
 0x145   :  { %v293_v32 = vld [vmem:[%s3892_s1 + $0x818] sm:$0xff]  ;;  %987 = vmatpush.msra.mxu0 %v229_v31  ;;  %v730_v31 = vadd.f32 %v729_v22, %v710_v18  ;;  %v1180_v17 = vld [vmem:[%s3894_s3 + $0x3e0] sm:$0xff]  ;;  %v1177_v22 = vld [vmem:[%s3894_s3 + $0x3c8] sm:$0xff] }
 0x146   :  { %v357_v33 = vld [vmem:[%s3892_s1 + $0xa18] sm:$0xff]  ;;  %1007 = vmatpush.msra.mxu1 %v293_v32  ;;  %v1065_v32 = vld [vmem:[%s3894_s3 + $0x48] sm:$0xff]  ;;  %v1072_v18 = vld [vmem:[%s3894_s3 + $0x80] sm:$0xff] }
 0x147   :  { %v425_v34 = vld [vmem:[%s3892_s1 + $0xc38] sm:$0xff]  ;;  %1027 = vmatpush.msra.mxu2 %v357_v33  ;;  %1256 = vmatpush.msrb.mxu0 %v1101_v35  ;;  %v1113_v33 = vld [vmem:[%s3894_s3 + $0x1c8] sm:$0xff]  ;;  %v1062_v35 = vld [vmem:[%s3894_s3 + $0x30] sm:$0xff] }
 0x148   :  { %v421_v37 = vld [vmem:[%s3892_s1 + $0xc18] sm:$0xff]  ;;  %1046 = vmatpush.msra.mxu3 %v425_v34  ;;  %1028 = vmatmul.f32.vlgmr.msra.gmra.mxu2 %v1634_v39  ;;  %v630_v39 = vadd.f32 %v3172_v7, %v610_v30  ;;  %v1093_v7 = vld [vmem:[%s3894_s3 + $0x128] sm:$0xff]  ;;  %v1066_v30 = vld [vmem:[%s3894_s3 + $0x50] sm:$0xff] }
 0x149   :  { %1276 = vmatpush.msrb.mxu1 %v1149_v36  ;;  %v1635_v42 = vld [vmem:[%s3891_s0 + $0x18] sm:$0xff]  ;;  %1257 = vmatpush.msrb.mxu0 %v1098_v0 }
 0x14a   :  { %1047 = vmatpush.msra.mxu3 %v421_v37  ;;  %988 = vmatmul.f32.vlgmr.msra.gmra.mxu0 %v1635_v42  ;;  %v1095_v44 = vld [vmem:[%s3894_s3 + $0x138] sm:$0xff]  ;;  %v1164_v42 = vld [vmem:[%s3894_s3 + $0x360] sm:$0xff]  ;;  %v3285_v24 = vmax.f32 %v630_v39, 0.0  ;;  %v1165_v39 = vld [vmem:[%s3894_s3 + $0x368] sm:$0xff] }
 0x14b   :  { %1048 = vmatmul.f32.vlgmr.msra.gmra.mxu3 %v1636_v43  ;;  %v1143_v45 = vld [vmem:[%s3894_s3 + $0x2b8] sm:$0xff]  ;;  %1277 = vmatpush.msrb.mxu1 %v1146_v40  ;;  %v1056_v43 = vld [vmem:[%s3894_s3] sm:$0xff] }
 0x14c   :  { %1008 = vmatmul.f32.vlgmr.msra.gmra.mxu1 %v1637_v48  ;;  %1258 = vmatpush.msrb.mxu0 %v1095_v44  ;;  %v1191_v58 = vld [vmem:[%s3894_s3 + $0x438] sm:$0xff]  ;;  %v1104_v44 = vld [vmem:[%s3894_s3 + $0x180] sm:$0xff]  ;;  %v1102_v48 = vld [vmem:[%s3894_s3 + $0x170] sm:$0xff] }
 0x14d   :  { %1278 = vmatpush.msrb.mxu1 %v1143_v45  ;;  %1296 = vmatpush.msrb.mxu2 %v1197_v50  ;;  %v1083_v61 = vld [vmem:[%s3894_s3 + $0xd8] sm:$0xff]  ;;  %v1150_v45 = vld [vmem:[%s3894_s3 + $0x2f0] sm:$0xff]  ;;  %v1144_v50 = vld [vmem:[%s3894_s3 + $0x2c0] sm:$0xff] }
 0x14e   :  { %1259 = vmatpush.msrb.mxu0 %v1092_v49  ;;  %v1131_v62 = vld [vmem:[%s3894_s3 + $0x258] sm:$0xff]  ;;  %1316 = vmatpush.msrb.mxu3 %v1245_v8 }
 0x14f   :  { %1279 = vmatpush.msrb.mxu1 %v1140_v1  ;;  %1297 = vmatpush.msrb.mxu2 %v1194_v55  ;;  %v1179_v16 = vld [vmem:[%s3894_s3 + $0x3d8] sm:$0xff]  ;;  %v1152_v55 = vld [vmem:[%s3894_s3 + $0x300] sm:$0xff] }
 0x150   :  { %1260 = vmatpush.msrb.mxu0 %v1089_v51  ;;  %v1071_v20 = vld [vmem:[%s3894_s3 + $0x78] sm:$0xff]  ;;  %v1096_v51 = vld [vmem:[%s3894_s3 + $0x140] sm:$0xff]  ;;  %1317 = vmatpush.msrb.mxu3 %v1242_v12  ;;  %v1246_v12 = vld [vmem:[%s3894_s3 + $0x5f0] sm:$0xff] }
 0x151   :  { %1280 = vmatpush.msrb.mxu1 %v1137_v52  ;;  %1298 = vmatpush.msrb.mxu2 %v1191_v58  ;;  %v1119_v21 = vld [vmem:[%s3894_s3 + $0x1f8] sm:$0xff]  ;;  %v749_v34 = vpop.f32.mrf.mxu0  ;;  %v1141_v52 = vld [vmem:[%s3894_s3 + $0x2a8] sm:$0xff] }
 0x152   :  { %1261 = vmatpush.msrb.mxu0 %v1086_v56  ;;  %v750_v36 = vadd.f32 %v749_v34, %v730_v31  ;;  %v1167_v38 = vld [vmem:[%s3894_s3 + $0x378] sm:$0xff]  ;;  %v1198_v56 = vld [vmem:[%s3894_s3 + $0x470] sm:$0xff] }
 0x153   :  { %1281 = vmatpush.msrb.mxu1 %v1134_v57  ;;  %1299 = vmatpush.msrb.mxu2 %v1188_v3  ;;  %v769_v37 = vpop.f32.mrf.mxu1  ;;  %v1059_v0 = vld [vmem:[%s3894_s3 + $0x18] sm:$0xff]  ;;  %v1090_v57 = vld [vmem:[%s3894_s3 + $0x110] sm:$0xff]  ;;  %v1129_v3 = vld [vmem:[%s3894_s3 + $0x248] sm:$0xff] }
 0x154   :  { %1262 = vmatpush.msrb.mxu0 %v1083_v61  ;;  %v1107_v40 = vld [vmem:[%s3894_s3 + $0x198] sm:$0xff]  ;;  %v770_v41 = vadd.f32 %v769_v37, %v750_v36  ;;  %v1132_v61 = vld [vmem:[%s3894_s3 + $0x260] sm:$0xff]  ;;  %v1105_v37 = vld [vmem:[%s3894_s3 + $0x188] sm:$0xff] }
 0x155   :  { %1282 = vmatpush.msrb.mxu1 %v1131_v62  ;;  %1300 = vmatpush.msrb.mxu2 %v1185_v6  ;;  %v1147_v49 = vld [vmem:[%s3894_s3 + $0x2d8] sm:$0xff]  ;;  %v1192_v62 = vld [vmem:[%s3894_s3 + $0x440] sm:$0xff]  ;;  %v1126_v6 = vld [vmem:[%s3894_s3 + $0x230] sm:$0xff] }
 0x156   :  { %1263 = vmatpush.msrb.mxu0 %v1080_v4  ;;  %v3280_v46 = vmax.f32 %v770_v41, 0.0  ;;  %v1099_v1 = vld [vmem:[%s3894_s3 + $0x158] sm:$0xff]  ;;  %v1189_v4 = vld [vmem:[%s3894_s3 + $0x428] sm:$0xff]  ;;  %v1060_v36 = vld [vmem:[%s3894_s3 + $0x20] sm:$0xff] }
 0x157   :  { %1283 = vmatpush.msrb.mxu1 %v1128_v5  ;;  %1301 = vmatpush.msrb.mxu2 %v1182_v13  ;;  %v1155_v53 = vld [vmem:[%s3894_s3 + $0x318] sm:$0xff]  ;;  %v1081_v5 = vld [vmem:[%s3894_s3 + $0xc8] sm:$0xff] }
 0x158   :  { %1264 = vmatpush.msrb.mxu0 %v1077_v10  ;;  %v1135_v58 = vld [vmem:[%s3894_s3 + $0x278] sm:$0xff]  ;;  %v1078_v10 = vld [vmem:[%s3894_s3 + $0xb0] sm:$0xff]  ;;  %v1221_v41 = vld [vmem:[%s3894_s3 + $0x528] sm:$0xff] }
 0x159   :  { %1284 = vmatpush.msrb.mxu1 %v1125_v11  ;;  %1302 = vmatpush.msrb.mxu2 %v1179_v16  ;;  %v1195_v59 = vld [vmem:[%s3894_s3 + $0x458] sm:$0xff] }
 0x15a   :  { %1265 = vmatpush.msrb.mxu0 %v1074_v14  ;;  %v1087_v60 = vld [vmem:[%s3894_s3 + $0xf8] sm:$0xff] }
 0x15b   :  { %1285 = vmatpush.msrb.mxu1 %v1122_v15  ;;  %1303 = vmatpush.msrb.mxu2 %v1176_v23  ;;  %v1123_v11 = vld [vmem:[%s3894_s3 + $0x218] sm:$0xff]  ;;  %v1120_v15 = vld [vmem:[%s3894_s3 + $0x200] sm:$0xff]  ;;  %v1069_v23 = vld [vmem:[%s3894_s3 + $0x68] sm:$0xff] }
 0x15c   :  { %1266 = vmatpush.msrb.mxu0 %v1071_v20  ;;  %v1183_v13 = vld [vmem:[%s3894_s3 + $0x3f8] sm:$0xff]  ;;  %v1117_v20 = vld [vmem:[%s3894_s3 + $0x1e8] sm:$0xff] }
 0x15d   :  { %1286 = vmatpush.msrb.mxu1 %v1119_v21  ;;  %1304 = vmatpush.msrb.mxu2 %v1173_v28  ;;  %v1075_v14 = vld [vmem:[%s3894_s3 + $0x98] sm:$0xff]  ;;  %v1236_v21 = vld [vmem:[%s3894_s3 + $0x5a0] sm:$0xff]  ;;  %v1174_v28 = vld [vmem:[%s3894_s3 + $0x3b0] sm:$0xff] }
 0x15e   :  { %1267 = vmatpush.msrb.mxu0 %v1068_v25  ;;  %v1239_v16 = vld [vmem:[%s3894_s3 + $0x5b8] sm:$0xff]  ;;  %v1114_v25 = vld [vmem:[%s3894_s3 + $0x1d0] sm:$0xff] }
 0x15f   :  { %1287 = vmatpush.msrb.mxu1 %v1116_v26  ;;  %1305 = vmatpush.msrb.mxu2 %v1170_v63  ;;  %v1233_v26 = vld [vmem:[%s3894_s3 + $0x588] sm:$0xff]  ;;  %v1111_v31 = vld [vmem:[%s3894_s3 + $0x1b8] sm:$0xff]  ;;  %v1108_v63 = vld [vmem:[%s3894_s3 + $0x1a0] sm:$0xff] }
 0x160   :  { %1268 = vmatpush.msrb.mxu0 %v1065_v32  ;;  %1318 = vmatpush.msrb.mxu3 %v1239_v16  ;;  %v1230_v32 = vld [vmem:[%s3894_s3 + $0x570] sm:$0xff]  ;;  %v1063_v34 = vld [vmem:[%s3894_s3 + $0x38] sm:$0xff] }
 0x161   :  { %1288 = vmatpush.msrb.mxu1 %v1113_v33  ;;  %1306 = vmatpush.msrb.mxu2 %v1167_v38  ;;  %v1171_v33 = vld [vmem:[%s3894_s3 + $0x398] sm:$0xff]  ;;  %v1224_v38 = vld [vmem:[%s3894_s3 + $0x540] sm:$0xff] }
 0x162   :  { %1269 = vmatpush.msrb.mxu0 %v1062_v35  ;;  %1319 = vmatpush.msrb.mxu3 %v1236_v21  ;;  %v1227_v35 = vld [vmem:[%s3894_s3 + $0x558] sm:$0xff]  ;;  %v1240_v21 = vld [vmem:[%s3894_s3 + $0x5c0] sm:$0xff] }
 0x163   :  { %1289 = vmatpush.msrb.mxu1 %v1110_v19  ;;  %1307 = vmatpush.msrb.mxu2 %v1164_v42  ;;  %v1168_v19 = vld [vmem:[%s3894_s3 + $0x380] sm:$0xff]  ;;  %v1103_v42 = vld [vmem:[%s3894_s3 + $0x178] sm:$0xff] }
 0x164   :  { %1270 = vmatpush.msrb.mxu0 %v1059_v0  ;;  %1320 = vmatpush.msrb.mxu3 %v1233_v26  ;;  %v1057_v0 = vld [vmem:[%s3894_s3 + $0x8] sm:$0xff]  ;;  %v1243_v16 = vld [vmem:[%s3894_s3 + $0x5d8] sm:$0xff] }
 0x165   :  { %1290 = vmatpush.msrb.mxu1 %v1107_v40  ;;  %1308 = vmatpush.msrb.mxu2 %v1161_v47  ;;  %v1151_v40 = vld [vmem:[%s3894_s3 + $0x2f8] sm:$0xff]  ;;  %v1218_v47 = vld [vmem:[%s3894_s3 + $0x510] sm:$0xff]  ;;  %v1237_v26 = vld [vmem:[%s3894_s3 + $0x5a8] sm:$0xff] }
 0x166   :  { %1271 = vmatpush.msrb.mxu0 %v1056_v43  ;;  %1321 = vmatpush.msrb.mxu3 %v1230_v32  ;;  %v1162_v43 = vld [vmem:[%s3894_s3 + $0x350] sm:$0xff] }
 0x167   :  { %1291 = vmatpush.msrb.mxu1 %v1104_v44  ;;  %1272 = vmatmul.f32.vlgmr.msrb.gmra.mxu0 %v3285_v24  ;;  %v1148_v44 = vld [vmem:[%s3894_s3 + $0x2e0] sm:$0xff]  ;;  %v1234_v32 = vld [vmem:[%s3894_s3 + $0x590] sm:$0xff] }
 0x168   :  { %1336 = vmatpush.msra.mxu0 %v1102_v48  ;;  %1292 = vmatmul.f32.vlgmr.msrb.gmra.mxu1 %v3280_v46  ;;  %v1159_v48 = vld [vmem:[%s3894_s3 + $0x338] sm:$0xff] }
 0x169   :  { %1356 = vmatpush.msra.mxu1 %v1150_v45  ;;  %1309 = vmatpush.msrb.mxu2 %v1158_v29  ;;  %v1100_v45 = vld [vmem:[%s3894_s3 + $0x160] sm:$0xff]  ;;  %v486_v29 = vperm.slane %v3099_v27, 2 }
 0x16a   :  { %1337 = vmatpush.msra.mxu0 %v1099_v1  ;;  %1322 = vmatpush.msrb.mxu3 %v1227_v35  ;;  %v1215_v1 = vld [vmem:[%s3894_s3 + $0x4f8] sm:$0xff] }
 0x16b   :  { %1357 = vmatpush.msra.mxu1 %v1147_v49  ;;  %1310 = vmatpush.msrb.mxu2 %v1155_v53  ;;  %v1145_v49 = vld [vmem:[%s3894_s3 + $0x2c8] sm:$0xff]  ;;  %v1231_v35 = vld [vmem:[%s3894_s3 + $0x578] sm:$0xff] }
 0x16c   :  { %1338 = vmatpush.msra.mxu0 %v1096_v51  ;;  %1323 = vmatpush.msrb.mxu3 %v1224_v38  ;;  %v1156_v51 = vld [vmem:[%s3894_s3 + $0x320] sm:$0xff] }
 0x16d   :  { %1358 = vmatpush.msra.mxu1 %v1144_v50  ;;  %1311 = vmatpush.msrb.mxu2 %v1152_v55  ;;  %v1097_v50 = vld [vmem:[%s3894_s3 + $0x148] sm:$0xff]  ;;  %v1228_v38 = vld [vmem:[%s3894_s3 + $0x560] sm:$0xff] }
 0x16e   :  { %1339 = vmatpush.msra.mxu0 %v1093_v7  ;;  %1324 = vmatpush.msrb.mxu3 %v1221_v41  ;;  %v1212_v7 = vld [vmem:[%s3894_s3 + $0x4e0] sm:$0xff]  ;;  %v1153_v55 = vld [vmem:[%s3894_s3 + $0x308] sm:$0xff] }
 0x16f   :  { %1359 = vmatpush.msra.mxu1 %v1141_v52  ;;  %1376 = vmatpush.msra.mxu2 %v1198_v56  ;;  %v1142_v52 = vld [vmem:[%s3894_s3 + $0x2b0] sm:$0xff]  ;;  %v1139_v56 = vld [vmem:[%s3894_s3 + $0x298] sm:$0xff]  ;;  %v1225_v41 = vld [vmem:[%s3894_s3 + $0x548] sm:$0xff] }
 0x170   :  { %1340 = vmatpush.msra.mxu0 %v1090_v57  ;;  %1325 = vmatpush.msrb.mxu3 %v1218_v47  ;;  %v1209_v57 = vld [vmem:[%s3894_s3 + $0x4c8] sm:$0xff] }
 0x171   :  { %1360 = vmatpush.msra.mxu1 %v1138_v54  ;;  %1377 = vmatpush.msra.mxu2 %v1195_v59  ;;  %v1094_v54 = vld [vmem:[%s3894_s3 + $0x130] sm:$0xff]  ;;  %v1091_v59 = vld [vmem:[%s3894_s3 + $0x118] sm:$0xff] }
 0x172   :  { %1341 = vmatpush.msra.mxu0 %v1087_v60  ;;  %1326 = vmatpush.msrb.mxu3 %v1215_v1  ;;  %v1196_v1 = vld [vmem:[%s3894_s3 + $0x460] sm:$0xff] }
 0x173   :  { %1361 = vmatpush.msra.mxu1 %v1135_v58  ;;  %1378 = vmatpush.msra.mxu2 %v1192_v62  ;;  %v1206_v62 = vld [vmem:[%s3894_s3 + $0x4b0] sm:$0xff]  ;;  %v829_v8 = vpop.f32.mrf.mxu0 }
 0x174   :  { %1342 = vmatpush.msra.mxu0 %v1084_v2  ;;  %v789_v53 = vpop.f32.mrf.mxu2  ;;  %1327 = vmatpush.msrb.mxu3 %v1212_v7  ;;  %v1088_v2 = vld [vmem:[%s3894_s3 + $0x100] sm:$0xff] }
 0x175   :  { %1362 = vmatpush.msra.mxu1 %v1132_v61  ;;  %1379 = vmatpush.msra.mxu2 %v1189_v4  ;;  %v790_v58 = vadd.f32 %v789_v53, %v486_v29  ;;  %v809_v60 = vpop.f32.mrf.mxu3  ;;  %v1136_v61 = vld [vmem:[%s3894_s3 + $0x280] sm:$0xff]  ;;  %v1203_v4 = vld [vmem:[%s3894_s3 + $0x498] sm:$0xff]  ;;  %v1193_v29 = vld [vmem:[%s3894_s3 + $0x448] sm:$0xff] }
 0x176   :  { %1343 = vmatpush.msra.mxu0 %v1081_v5  ;;  %1328 = vmatpush.msrb.mxu3 %v1209_v57  ;;  %v1210_v53 = vld [vmem:[%s3894_s3 + $0x4d0] sm:$0xff]  ;;  %v1184_v7 = vld [vmem:[%s3894_s3 + $0x400] sm:$0xff] }
 0x177   :  { %1363 = vmatpush.msra.mxu1 %v1129_v3  ;;  %1380 = vmatpush.msra.mxu2 %v1186_v9  ;;  %v1133_v3 = vld [vmem:[%s3894_s3 + $0x268] sm:$0xff]  ;;  %v810_v5 = vadd.f32 %v809_v60, %v790_v58  ;;  %v1130_v9 = vld [vmem:[%s3894_s3 + $0x250] sm:$0xff]  ;;  %v1172_v60 = vld [vmem:[%s3894_s3 + $0x3a0] sm:$0xff] }
 0x178   :  { %1344 = vmatpush.msra.mxu0 %v1078_v10  ;;  %1329 = vmatpush.msrb.mxu3 %v1206_v62  ;;  %v1200_v10 = vld [vmem:[%s3894_s3 + $0x480] sm:$0xff]  ;;  %v1178_v57 = vld [vmem:[%s3894_s3 + $0x3d0] sm:$0xff]  ;;  %v1201_v58 = vld [vmem:[%s3894_s3 + $0x488] sm:$0xff] }
 0x179   :  { %1364 = vmatpush.msra.mxu1 %v1126_v6  ;;  %1381 = vmatpush.msra.mxu2 %v1183_v13  ;;  %v1085_v6 = vld [vmem:[%s3894_s3 + $0xe8] sm:$0xff]  ;;  %v1127_v13 = vld [vmem:[%s3894_s3 + $0x238] sm:$0xff]  ;;  %v1166_v62 = vld [vmem:[%s3894_s3 + $0x370] sm:$0xff] }
 0x17a   :  { %1345 = vmatpush.msra.mxu0 %v1075_v14  ;;  %1330 = vmatpush.msrb.mxu3 %v1203_v4  ;;  %v830_v14 = vadd.f32 %v829_v8, %v810_v5  ;;  %v1160_v5 = vld [vmem:[%s3894_s3 + $0x340] sm:$0xff] }
 0x17b   :  { %1365 = vmatpush.msra.mxu1 %v1123_v11  ;;  %1382 = vmatpush.msra.mxu2 %v1180_v17  ;;  %v1082_v11 = vld [vmem:[%s3894_s3 + $0xd0] sm:$0xff]  ;;  %v849_v17 = vpop.f32.mrf.mxu1 }
 0x17c   :  { %1346 = vmatpush.msra.mxu0 %v1072_v18  ;;  %1331 = vmatpush.msrb.mxu3 %v1200_v10  ;;  %v1124_v18 = vld [vmem:[%s3894_s3 + $0x220] sm:$0xff] }
 0x17d   :  { %1366 = vmatpush.msra.mxu1 %v1120_v15  ;;  %1383 = vmatpush.msra.mxu2 %v1177_v22  ;;  %v1079_v15 = vld [vmem:[%s3894_s3 + $0xb8] sm:$0xff]  ;;  %v1121_v22 = vld [vmem:[%s3894_s3 + $0x208] sm:$0xff] }
 0x17e   :  { %1347 = vmatpush.msra.mxu0 %v1069_v23  ;;  %1396 = vmatpush.msra.mxu3 %v1246_v12  ;;  %v850_v23 = vadd.f32 %v849_v17, %v830_v14 }
 0x17f   :  { %1367 = vmatpush.msra.mxu1 %v1117_v20  ;;  %1384 = vmatpush.msra.mxu2 %v1174_v28  ;;  %v1076_v20 = vld [vmem:[%s3894_s3 + $0xa0] sm:$0xff] }
 0x180   :  { %1348 = vmatpush.msra.mxu0 %v1066_v30  ;;  %1397 = vmatpush.msra.mxu3 %v1243_v16  ;;  %v1118_v30 = vld [vmem:[%s3894_s3 + $0x1f0] sm:$0xff] }
 0x181   :  { %1368 = vmatpush.msra.mxu1 %v1114_v25  ;;  %1385 = vmatpush.msra.mxu2 %v1171_v33  ;;  %v1073_v25 = vld [vmem:[%s3894_s3 + $0x88] sm:$0xff]  ;;  %v1115_v33 = vld [vmem:[%s3894_s3 + $0x1d8] sm:$0xff] }
 0x182   :  { %1349 = vmatpush.msra.mxu0 %v1063_v34  ;;  %1398 = vmatpush.msra.mxu3 %v1240_v21 }
 0x183   :  { %1369 = vmatpush.msra.mxu1 %v1111_v31  ;;  %1386 = vmatpush.msra.mxu2 %v1168_v19  ;;  %v869_v28 = vpop.f32.mrf.mxu2  ;;  %v1070_v31 = vld [vmem:[%s3894_s3 + $0x70] sm:$0xff] }
 0x184   :  { %1350 = vmatpush.msra.mxu0 %v1060_v36  ;;  %1399 = vmatpush.msra.mxu3 %v1237_v26  ;;  %v870_v34 = vadd.f32 %v869_v28, %v850_v23  ;;  %v1112_v36 = vld [vmem:[%s3894_s3 + $0x1c0] sm:$0xff]  ;;  %v1247_v23 = vld [vmem:[%s3894_s3 + $0x5f8] sm:$0xff]  ;;  %v1241_v26 = vld [vmem:[%s3894_s3 + $0x5c8] sm:$0xff] }
 0x185   :  { %1370 = vmatpush.msra.mxu1 %v1108_v63  ;;  %1387 = vmatpush.msra.mxu2 %v1165_v39  ;;  %v1067_v63 = vld [vmem:[%s3894_s3 + $0x58] sm:$0xff]  ;;  %v1109_v39 = vld [vmem:[%s3894_s3 + $0x1a8] sm:$0xff]  ;;  %v1238_v28 = vld [vmem:[%s3894_s3 + $0x5b0] sm:$0xff] }
 0x186   :  { %1351 = vmatpush.msra.mxu0 %v1057_v0  ;;  %v889_v19 = vpop.f32.mrf.mxu3  ;;  %1400 = vmatpush.msra.mxu3 %v1234_v32  ;;  %v1229_v32 = vld [vmem:[%s3894_s3 + $0x568] sm:$0xff] }
 0x187   :  { %1371 = vmatpush.msra.mxu1 %v1105_v37  ;;  %1352 = vmatmul.f32.vlgmr.msra.gmra.mxu0 %v3285_v24  ;;  %v1064_v37 = vld [vmem:[%s3894_s3 + $0x40] sm:$0xff]  ;;  %v890_v0 = vadd.f32 %v889_v19, %v870_v34  ;;  %v1223_v34 = vld [vmem:[%s3894_s3 + $0x538] sm:$0xff]  ;;  %v1214_v19 = vld [vmem:[%s3894_s3 + $0x4f0] sm:$0xff] }
 0x188   :  { %1372 = vmatmul.f32.vlgmr.msra.gmra.mxu1 %v3280_v46  ;;  %1416 = vmatpush.msrb.mxu0 %v1103_v42  ;;  %v1106_v42 = vld [vmem:[%s3894_s3 + $0x190] sm:$0xff] }
 0x189   :  { %1436 = vmatpush.msrb.mxu1 %v1151_v40  ;;  %1388 = vmatpush.msra.mxu2 %v1162_v43  ;;  %v1061_v40 = vld [vmem:[%s3894_s3 + $0x28] sm:$0xff] }
 0x18a   :  { %1417 = vmatpush.msrb.mxu0 %v1100_v45  ;;  %1401 = vmatpush.msra.mxu3 %v1231_v35  ;;  %v1217_v35 = vld [vmem:[%s3894_s3 + $0x508] sm:$0xff] }
 0x18b   :  { %1437 = vmatpush.msrb.mxu1 %v1148_v44  ;;  %1389 = vmatpush.msra.mxu2 %v1159_v48  ;;  %v1058_v44 = vld [vmem:[%s3894_s3 + $0x10] sm:$0xff]  ;;  %v1199_v48 = vld [vmem:[%s3894_s3 + $0x478] sm:$0xff] }
 0x18c   :  { %1418 = vmatpush.msrb.mxu0 %v1097_v50  ;;  %1402 = vmatpush.msra.mxu3 %v1228_v38  ;;  %v1219_v50 = vld [vmem:[%s3894_s3 + $0x518] sm:$0xff]  ;;  %v1205_v38 = vld [vmem:[%s3894_s3 + $0x4a8] sm:$0xff] }
 0x18d   :  { %1438 = vmatpush.msrb.mxu1 %v1145_v49  ;;  %1390 = vmatpush.msra.mxu2 %v1156_v51  ;;  %v1222_v49 = vld [vmem:[%s3894_s3 + $0x530] sm:$0xff]  ;;  %v1213_v51 = vld [vmem:[%s3894_s3 + $0x4e8] sm:$0xff] }
 0x18e   :  { %1419 = vmatpush.msrb.mxu0 %v1094_v54  ;;  %1403 = vmatpush.msra.mxu3 %v1225_v41  ;;  %v1207_v54 = vld [vmem:[%s3894_s3 + $0x4b8] sm:$0xff] }
 0x18f   :  { %1439 = vmatpush.msrb.mxu1 %v1142_v52  ;;  %1391 = vmatpush.msra.mxu2 %v1153_v55  ;;  %v1187_v52 = vld [vmem:[%s3894_s3 + $0x418] sm:$0xff]  ;;  %v1181_v55 = vld [vmem:[%s3894_s3 + $0x3e8] sm:$0xff] }
 0x190   :  { %1420 = vmatpush.msrb.mxu0 %v1091_v59  ;;  %1404 = vmatpush.msra.mxu3 %v1222_v49  ;;  %v1175_v59 = vld [vmem:[%s3894_s3 + $0x3b8] sm:$0xff] }
 0x191   :  { %1440 = vmatpush.msrb.mxu1 %v1139_v56  ;;  %v1204_v56 = vld [vmem:[%s3894_s3 + $0x4a0] sm:$0xff]  ;;  %v1530_v41 = vld [vmem:[%s3896_s5 + $0xf8] sm:$0xff] }
 0x192   :  { %1421 = vmatpush.msrb.mxu0 %v1088_v2  ;;  %1405 = vmatpush.msra.mxu3 %v1219_v50  ;;  %v487_v2 = vperm.slane %v3099_v27, 3  ;;  %v1526_v49 = vld [vmem:[%s3896_s5 + $0xd8] sm:$0xff]  ;;  %v1508_v50 = vld [vmem:[%s3896_s5 + $0x48] sm:$0xff] }
 0x193   :  { %1441 = vmatpush.msrb.mxu1 %v1136_v61  ;;  %v1169_v61 = vld [vmem:[%s3894_s3 + $0x388] sm:$0xff] }
 0x194   :  { %1422 = vmatpush.msrb.mxu0 %v1085_v6 }
 0x195   :  { %1442 = vmatpush.msrb.mxu1 %v1133_v3  ;;  %v1163_v3 = vld [vmem:[%s3894_s3 + $0x358] sm:$0xff] }
 0x196   :  { %1423 = vmatpush.msrb.mxu0 %v1082_v11  ;;  %v909_v43 = vpop.f32.mrf.mxu0  ;;  %v1154_v11 = vld [vmem:[%s3894_s3 + $0x310] sm:$0xff] }
 0x197   :  { %1443 = vmatpush.msrb.mxu1 %v1130_v9  ;;  %v910_v45 = vadd.f32 %v909_v43, %v890_v0  ;;  %v1157_v9 = vld [vmem:[%s3894_s3 + $0x328] sm:$0xff]  ;;  %v1514_v0 = vld [vmem:[%s3896_s5 + $0x78] sm:$0xff]  ;;  %v1529_v43 = vld [vmem:[%s3896_s5 + $0xf0] sm:$0xff] }
 0x198   :  { %1424 = vmatpush.msrb.mxu0 %v1079_v15 }
 0x199   :  { %1444 = vmatpush.msrb.mxu1 %v1127_v13  ;;  %v3610_v47 = vmax.f32 %v910_v45, 0.0  ;;  %v1511_v45 = vld [vmem:[%s3896_s5 + $0x60] sm:$0xff] }
 0x19a   :  { %1425 = vmatpush.msrb.mxu0 %v1076_v20 }
 0x19b   :  { %1445 = vmatpush.msrb.mxu1 %v1124_v18  ;;  %1312 = vmatmul.f32.vlgmr.msrb.gmra.mxu2 %v3610_v47 }
 0x19c   :  { %1426 = vmatpush.msrb.mxu0 %v1073_v25  ;;  %1456 = vmatpush.msrb.mxu2 %v1199_v48  ;;  %v1244_v25 = vld [vmem:[%s3894_s3 + $0x5e0] sm:$0xff]  ;;  %v1510_v48 = vld [vmem:[%s3896_s5 + $0x58] sm:$0xff] }
 0x19d   :  { %1446 = vmatpush.msrb.mxu1 %v1121_v22 }
 0x19e   :  { %1427 = vmatpush.msrb.mxu0 %v1070_v31  ;;  %1457 = vmatpush.msrb.mxu2 %v1196_v1  ;;  %v1232_v31 = vld [vmem:[%s3894_s3 + $0x580] sm:$0xff]  ;;  %v1509_v1 = vld [vmem:[%s3896_s5 + $0x50] sm:$0xff] }
 0x19f   :  { %1447 = vmatpush.msrb.mxu1 %v1118_v30  ;;  %v1235_v30 = vld [vmem:[%s3894_s3 + $0x598] sm:$0xff] }
 0x1a0   :  { %1428 = vmatpush.msrb.mxu0 %v1067_v63  ;;  %1458 = vmatpush.msrb.mxu2 %v1193_v29  ;;  %v1220_v63 = vld [vmem:[%s3894_s3 + $0x520] sm:$0xff] }
 0x1a1   :  { %1448 = vmatpush.msrb.mxu1 %v1115_v33  ;;  %v1226_v33 = vld [vmem:[%s3894_s3 + $0x550] sm:$0xff]  ;;  %v1507_v29 = vld [vmem:[%s3896_s5 + $0x40] sm:$0xff] }
 0x1a2   :  { %1429 = vmatpush.msrb.mxu0 %v1064_v37  ;;  %v1208_v37 = vld [vmem:[%s3894_s3 + $0x4c0] sm:$0xff] }
 0x1a3   :  { %1449 = vmatpush.msrb.mxu1 %v1112_v36  ;;  %1392 = vmatmul.f32.vlgmr.msra.gmra.mxu2 %v3610_v47  ;;  %v1211_v36 = vld [vmem:[%s3894_s3 + $0x4d8] sm:$0xff] }
 0x1a4   :  { %1430 = vmatpush.msrb.mxu0 %v1061_v40  ;;  %v1513_v40 = vld [vmem:[%s3896_s5 + $0x70] sm:$0xff] }
 0x1a5   :  { %1450 = vmatpush.msrb.mxu1 %v1109_v39  ;;  %v1202_v39 = vld [vmem:[%s3894_s3 + $0x490] sm:$0xff] }
 0x1a6   :  { %1431 = vmatpush.msrb.mxu0 %v1058_v44  ;;  %v1528_v44 = vld [vmem:[%s3896_s5 + $0xe8] sm:$0xff] }
 0x1a7   :  { %1451 = vmatpush.msrb.mxu1 %v1106_v42  ;;  %1432 = vmatmul.f32.vlgmr.msrb.gmra.mxu0 %v3285_v24  ;;  %v1190_v24 = vld [vmem:[%s3894_s3 + $0x430] sm:$0xff]  ;;  %v1512_v42 = vld [vmem:[%s3896_s5 + $0x68] sm:$0xff] }
 0x1a8   :  { %1452 = vmatmul.f32.vlgmr.msrb.gmra.mxu1 %v3280_v46  ;;  %v1216_v46 = vld [vmem:[%s3894_s3 + $0x500] sm:$0xff]  ;;  %1459 = vmatpush.msrb.mxu2 %v1190_v24  ;;  %v1505_v24 = vld [vmem:[%s3896_s5 + $0x30] sm:$0xff] }
 0x1a9   :  { %1406 = vmatpush.msra.mxu3 %v1216_v46  ;;  %1551 = vmatpush.msra.mxu0 %v1514_v0  ;;  %v1506_v46 = vld [vmem:[%s3896_s5 + $0x38] sm:$0xff] }
 0x1aa   :  { %1460 = vmatpush.msrb.mxu2 %v1187_v52  ;;  %1571 = vmatpush.msra.mxu1 %v1530_v41  ;;  %v1504_v52 = vld [vmem:[%s3896_s5 + $0x28] sm:$0xff] }
 0x1ab   :  { %1407 = vmatpush.msra.mxu3 %v1213_v51  ;;  %v929_v4 = vpop.f32.mrf.mxu1  ;;  %1552 = vmatpush.msra.mxu0 %v1513_v40  ;;  %v1525_v51 = vld [vmem:[%s3896_s5 + $0xd0] sm:$0xff] }
 0x1ac   :  { %1461 = vmatpush.msrb.mxu2 %v1184_v7  ;;  %v930_v6 = vadd.f32 %v929_v4, %v487_v2  ;;  %1572 = vmatpush.msra.mxu1 %v1529_v43  ;;  %v1503_v7 = vld [vmem:[%s3896_s5 + $0x20] sm:$0xff]  ;;  %v1546_v2 = vld [vmem:[%s3896_s5 + $0x178] sm:$0xff] }
 0x1ad   :  { %1408 = vmatpush.msra.mxu3 %v1210_v53  ;;  %1553 = vmatpush.msra.mxu0 %v1512_v42  ;;  %v1524_v53 = vld [vmem:[%s3896_s5 + $0xc8] sm:$0xff]  ;;  %v1518_v4 = vld [vmem:[%s3896_s5 + $0x98] sm:$0xff] }
 0x1ae   :  { %1462 = vmatpush.msrb.mxu2 %v1181_v55  ;;  %v969_v27 = vpop.f32.mrf.mxu3  ;;  %1573 = vmatpush.msra.mxu1 %v1528_v44  ;;  %v1502_v55 = vld [vmem:[%s3896_s5 + $0x18] sm:$0xff] }
 0x1af   :  { %1409 = vmatpush.msra.mxu3 %v1207_v54  ;;  %v949_v8 = vpop.f32.mrf.mxu2  ;;  %1554 = vmatpush.msra.mxu0 %v1511_v45  ;;  %v1523_v54 = vld [vmem:[%s3896_s5 + $0xc0] sm:$0xff] }
 0x1b0   :  { %1463 = vmatpush.msrb.mxu2 %v1178_v57  ;;  %v950_v10 = vadd.f32 %v949_v8, %v930_v6  ;;  %v1501_v57 = vld [vmem:[%s3896_s5 + $0x10] sm:$0xff]  ;;  %v1544_v6 = vld [vmem:[%s3896_s5 + $0x168] sm:$0xff] }
 0x1b1   :  { %1410 = vmatpush.msra.mxu3 %v1204_v56  ;;  %1555 = vmatpush.msra.mxu0 %v1510_v48  ;;  %v1522_v56 = vld [vmem:[%s3896_s5 + $0xb8] sm:$0xff]  ;;  %v1516_v8 = vld [vmem:[%s3896_s5 + $0x88] sm:$0xff] }
 0x1b2   :  { %1464 = vmatpush.msrb.mxu2 %v1175_v59  ;;  %v970_v12 = vadd.f32 %v969_v27, %v950_v10  ;;  %v1500_v59 = vld [vmem:[%s3896_s5 + $0x8] sm:$0xff]  ;;  %v1515_v10 = vld [vmem:[%s3896_s5 + $0x80] sm:$0xff]  ;;  %v1542_v27 = vld [vmem:[%s3896_s5 + $0x158] sm:$0xff] }
 0x1b3   :  { %1411 = vmatpush.msra.mxu3 %v1201_v58  ;;  %1556 = vmatpush.msra.mxu0 %v1509_v1  ;;  %v1521_v58 = vld [vmem:[%s3896_s5 + $0xb0] sm:$0xff] }
 0x1b4   :  { %1465 = vmatpush.msrb.mxu2 %v1172_v60  ;;  %v1520_v60 = vld [vmem:[%s3896_s5 + $0xa8] sm:$0xff] }
 0x1b5   :  { %1557 = vmatpush.msra.mxu0 %v1508_v50 }
 0x1b6   :  { %1466 = vmatpush.msrb.mxu2 %v1169_v61  ;;  %v1499_v61 = vld [vmem:[%s3896_s5] sm:$0xff] }
 0x1b7   :  { %1558 = vmatpush.msra.mxu0 %v1507_v29 }
 0x1b8   :  { %1467 = vmatpush.msrb.mxu2 %v1166_v62  ;;  %v1519_v62 = vld [vmem:[%s3896_s5 + $0xa0] sm:$0xff] }
 0x1b9   :  { %1559 = vmatpush.msra.mxu0 %v1506_v46 }
 0x1ba   :  { %1468 = vmatpush.msrb.mxu2 %v1163_v3  ;;  %v1545_v3 = vld [vmem:[%s3896_s5 + $0x170] sm:$0xff] }
 0x1bb   :  { %1560 = vmatpush.msra.mxu0 %v1505_v24 }
 0x1bc   :  { %1469 = vmatpush.msrb.mxu2 %v1160_v5  ;;  %v1517_v5 = vld [vmem:[%s3896_s5 + $0x90] sm:$0xff] }
 0x1bd   :  { %1561 = vmatpush.msra.mxu0 %v1504_v52 }
 0x1be   :  { %1470 = vmatpush.msrb.mxu2 %v1157_v9  ;;  %v1543_v9 = vld [vmem:[%s3896_s5 + $0x160] sm:$0xff] }
 0x1bf   :  { %1562 = vmatpush.msra.mxu0 %v1503_v7 }
 0x1c0   :  { %1471 = vmatpush.msrb.mxu2 %v1154_v11  ;;  %v1541_v11 = vld [vmem:[%s3896_s5 + $0x150] sm:$0xff] }
 0x1c1   :  { %1472 = vmatmul.f32.vlgmr.msrb.gmra.mxu2 %v3610_v47  ;;  %v1527_v47 = vld [vmem:[%s3896_s5 + $0xe0] sm:$0xff]  ;;  %1563 = vmatpush.msra.mxu0 %v1502_v55 }
 0x1c2   :  { %1574 = vmatpush.msra.mxu1 %v1527_v47  ;;  %1591 = vmatpush.msra.mxu2 %v1546_v2 }
 0x1c3   :  { %1564 = vmatpush.msra.mxu0 %v1501_v57 }
 0x1c4   :  { %1575 = vmatpush.msra.mxu1 %v1526_v49  ;;  %1592 = vmatpush.msra.mxu2 %v1545_v3 }
 0x1c5   :  { %1565 = vmatpush.msra.mxu0 %v1500_v59 }
 0x1c6   :  { %1576 = vmatpush.msra.mxu1 %v1525_v51  ;;  %1593 = vmatpush.msra.mxu2 %v1544_v6  ;;  %v1630_v51 = vld [vmem:[%s3897_s6] ss:$0 sm:$0xff] }
 0x1c7   :  { %v989_v13 = vpop.f32.mrf.mxu0  ;;  %1566 = vmatpush.msra.mxu0 %v1499_v61 }
 0x1c8   :  { %v990_v14 = vadd.f32 %v989_v13, %v970_v12  ;;  %1577 = vmatpush.msra.mxu1 %v1524_v53  ;;  %1594 = vmatpush.msra.mxu2 %v1543_v9  ;;  %v1540_v12 = vld [vmem:[%s3896_s5 + $0x148] sm:$0xff]  ;;  %v1539_v13 = vld [vmem:[%s3896_s5 + $0x140] sm:$0xff] }
 0x1c9   :  { %v1009_v15 = vpop.f32.mrf.mxu1 }
 0x1ca   :  { %v1010_v16 = vadd.f32 %v1009_v15, %v990_v14  ;;  %1578 = vmatpush.msra.mxu1 %v1523_v54  ;;  %1595 = vmatpush.msra.mxu2 %v1542_v27  ;;  %v1248_v14 = vld [vmem:[%s3895_s4] sm:$0x7]  ;;  %v1538_v15 = vld [vmem:[%s3896_s5 + $0x138] sm:$0xff] }
 0x1cb   :  { %v1029_v17 = vpop.f32.mrf.mxu2  ;;  %v1252_v44 = vperm.slane %v1248_v14, 2 }
 0x1cc   :  { %v1030_v18 = vadd.f32 %v1029_v17, %v1010_v16  ;;  %1579 = vmatpush.msra.mxu1 %v1522_v56  ;;  %1596 = vmatpush.msra.mxu2 %v1541_v11  ;;  %v1250_v17 = vperm.slane %v1248_v14, 0 }
 0x1ce   :  { %v1049_v20 = vpop.f32.mrf.mxu3  ;;  %1580 = vmatpush.msra.mxu1 %v1521_v58  ;;  %1597 = vmatpush.msra.mxu2 %v1540_v12 }
 0x1cf   :  { %v1050_v21 = vadd.f32 %v1049_v20, %v1030_v18  ;;  %v1537_v18 = vld [vmem:[%s3896_s5 + $0x130] sm:$0xff]  ;;  %v1536_v20 = vld [vmem:[%s3896_s5 + $0x128] sm:$0xff] }
 0x1d0   :  { %1581 = vmatpush.msra.mxu1 %v1520_v60  ;;  %1598 = vmatpush.msra.mxu2 %v1539_v13 }
 0x1d1   :  { %v1055_v22 = vmax.f32 %v1050_v21, 0.0 }
 0x1d2   :  { %1582 = vmatpush.msra.mxu1 %v1519_v62  ;;  %1599 = vmatpush.msra.mxu2 %v1538_v15 }
 0x1d3   :  { %1332 = vmatmul.f32.vlgmr.msrb.gmra.mxu3 %v1055_v22 }
 0x1d4   :  { %1476 = vmatpush.msrb.mxu3 %v1247_v23  ;;  %1583 = vmatpush.msra.mxu1 %v1518_v4 }
 0x1d5   :  { %1600 = vmatpush.msra.mxu2 %v1537_v18 }
 0x1d6   :  { %1477 = vmatpush.msrb.mxu3 %v1244_v25  ;;  %1584 = vmatpush.msra.mxu1 %v1517_v5  ;;  %v1535_v25 = vld [vmem:[%s3896_s5 + $0x120] sm:$0xff] }
 0x1d7   :  { %1601 = vmatpush.msra.mxu2 %v1536_v20 }
 0x1d8   :  { %1478 = vmatpush.msrb.mxu3 %v1241_v26  ;;  %1585 = vmatpush.msra.mxu1 %v1516_v8 }
 0x1d9   :  { %1602 = vmatpush.msra.mxu2 %v1535_v25 }
 0x1da   :  { %1479 = vmatpush.msrb.mxu3 %v1238_v28  ;;  %1586 = vmatpush.msra.mxu1 %v1515_v10  ;;  %v1251_v28 = vperm.slane %v1248_v14, 1 }
 0x1db   :  { %1412 = vmatmul.f32.vlgmr.msra.gmra.mxu3 %v1055_v22 }
 0x1dc   :  { %1480 = vmatpush.msrb.mxu3 %v1235_v30  ;;  %v1534_v30 = vld [vmem:[%s3896_s5 + $0x118] sm:$0xff] }
 0x1dd   :  { %1603 = vmatpush.msra.mxu2 %v1534_v30 }
 0x1de   :  { %1481 = vmatpush.msrb.mxu3 %v1232_v31 }
 0x1e0   :  { %1482 = vmatpush.msrb.mxu3 %v1229_v32 }
 0x1e2   :  { %1483 = vmatpush.msrb.mxu3 %v1226_v33 }
 0x1e4   :  { %1484 = vmatpush.msrb.mxu3 %v1223_v34  ;;  %v1273_v16 = vpop.f32.mrf.mxu0 }
 0x1e5   :  { %v1293_v21 = vpop.f32.mrf.mxu1  ;;  %v1274_v23 = vadd.f32 %v1273_v16, %v1250_v17 }
 0x1e6   :  { %1485 = vmatpush.msrb.mxu3 %v1220_v63 }
 0x1e7   :  { %v1294_v26 = vadd.f32 %v1293_v21, %v1274_v23 }
 0x1e8   :  { %1486 = vmatpush.msrb.mxu3 %v1217_v35  ;;  %v1533_v35 = vld [vmem:[%s3896_s5 + $0x110] sm:$0xff] }
 0x1e9   :  { %1604 = vmatpush.msra.mxu2 %v1533_v35 }
 0x1ea   :  { %1487 = vmatpush.msrb.mxu3 %v1214_v19 }
 0x1ec   :  { %1488 = vmatpush.msrb.mxu3 %v1211_v36  ;;  %v1532_v36 = vld [vmem:[%s3896_s5 + $0x108] sm:$0xff] }
 0x1ed   :  { %1605 = vmatpush.msra.mxu2 %v1532_v36 }
 0x1ee   :  { %1489 = vmatpush.msrb.mxu3 %v1208_v37  ;;  %v1531_v37 = vld [vmem:[%s3896_s5 + $0x100] sm:$0xff] }
 0x1ef   :  { %1606 = vmatpush.msra.mxu2 %v1531_v37 }
 0x1f0   :  { %1490 = vmatpush.msrb.mxu3 %v1205_v38 }
 0x1f2   :  { %1491 = vmatpush.msrb.mxu3 %v1202_v39 }
 0x1f3   :  { %1492 = vmatmul.f32.vlgmr.msrb.gmra.mxu3 %v1055_v22 }
 0x204   :  { %v1353_v31 = vpop.f32.mrf.mxu0 }
 0x205   :  { %v1354_v34 = vadd.f32 %v1353_v31, %v1251_v28  ;;  %v1373_v38 = vpop.f32.mrf.mxu1 }
 0x207   :  { %v1374_v0 = vadd.f32 %v1373_v38, %v1354_v34 }
 0x21e   :  { %v1313_v22 = vpop.f32.mrf.mxu2 }
 0x21f   :  { %v1314_v32 = vadd.f32 %v1313_v22, %v1294_v26 }
 0x224   :  { %v1433_v45 = vpop.f32.mrf.mxu0 }
 0x225   :  { %v1434_v47 = vadd.f32 %v1433_v45, %v1252_v44  ;;  %v1453_v48 = vpop.f32.mrf.mxu1 }
 0x226   :  { %v1393_v39 = vpop.f32.mrf.mxu2 }
 0x227   :  { %v1394_v40 = vadd.f32 %v1393_v39, %v1374_v0  ;;  %v1454_v1 = vadd.f32 %v1453_v48, %v1434_v47 }
 0x244   :  { %v1473_v49 = vpop.f32.mrf.mxu2 }
 0x245   :  { %v1474_v50 = vadd.f32 %v1473_v49, %v1454_v1 }
 0x256   :  { %v1333_v33 = vpop.f32.mrf.mxu3 }
 0x257   :  { %v1334_v63 = vadd.f32 %v1333_v33, %v1314_v32 }
 0x259   :  { %v1496_v19 = vmax.f32 %v1334_v63, 0.0 }
 0x25b   :  { %1567 = vmatmul.f32.vlgmr.msra.gmra.mxu0 %v1496_v19 }
 0x25e   :  { %v1413_v41 = vpop.f32.mrf.mxu3 }
 0x25f   :  { %v1414_v42 = vadd.f32 %v1413_v41, %v1394_v40 }
 0x261   :  { %v1497_v43 = vmax.f32 %v1414_v42, 0.0 }
 0x263   :  { %1587 = vmatmul.f32.vlgmr.msra.gmra.mxu1 %v1497_v43 }
 0x276   :  { %v1493_v29 = vpop.f32.mrf.mxu3 }
 0x277   :  { %v1494_v46 = vadd.f32 %v1493_v29, %v1474_v50 }
 0x279   :  { %v1498_v24 = vmax.f32 %v1494_v46, 0.0 }
 0x27b   :  { %1607 = vmatmul.f32.vlgmr.msra.gmra.mxu2 %v1498_v24 }
 0x2d8   :  { %v1568_v52 = vpop.f32.mrf.mxu0 }
 0x2d9   :  { %v1569_v7 = vadd.f32 %v1630_v51, %v1568_v52 }
 0x2e0   :  { %v1588_v53 = vpop.f32.mrf.mxu1 }
 0x2e1   :  { %v1589_v54 = vadd.f32 %v1588_v53, %v1569_v7 }
 0x2fe   :  { %v1608_v55 = vpop.f32.mrf.mxu2 }
 0x2ff   :  { %v1609_v56 = vadd.f32 %v1608_v55, %v1589_v54 }
 0x301   :  { %v1611_v57 = vmax.f32 %v1609_v56, 0.0 }
 0x303   :  { %1612 = vst [vmem:[#allocation2] sm:$0xff] %v1611_v57 }
 0x304   :  { %1623 = dma.vmem_to_hbm [thread:$0]  %s1619_s2, 128, %s1621_s18, [#allocation3]  }
 0x305   :  { %1662 = dma.done.wait [#allocation3], 128  }
 0x306   :  { %1663 = vsyncadd [#allocation3], 4294967168 }
 0x307   :  { %1628 = vsyncpa [#allocation3], 1 }

</bundles_post_ra>
